<compile_context>
chip_gen: v6e
topology: v6e:2x2x1
jax: 0.10.0
libtpu: 0.0.40
codegen_flags: <defaults>
</compile_context>

<pallas_src>
import jax
import jax.numpy as jnp
import numpy as np
from jax.experimental import pallas as pl
from jax.experimental.pallas import tpu as pltpu

NEG_SLOPE = 0.01
SKIP_WEIGHT_H = 0.5
X_CONNECTION_INIT = 0.25
ALL_SIGMAS = [1.5 ** x for x in range(15)]
N_SIGMAS = len(ALL_SIGMAS)

_SIDE_SLAB_KEYS = ("w1_hsd", "w1_e", "w1_d", "b1", "w2c", "b2", "bc1e", "wc2r", "bc2",
                   "nw1", "nb1", "nw2", "nb2")


def _leaky(x):
    # torch.nn.LeakyReLU semantics
    return jnp.where(x >= 0, x, NEG_SLOPE * x)


# ----------------------------------------------------------------------------
# In-kernel building blocks
# ----------------------------------------------------------------------------
def _pair_sq_dists(x):
    """d2[i, j] = |x_i - x_j|^2 via the Gram identity (MXU) -- used for the geometry loss."""
    xt = x.T                                                       # [3, N]
    g = jnp.dot(x, xt, preferred_element_type=jnp.float32)         # [N, N]
    r_col = jnp.sum(x * x, axis=-1, keepdims=True)                 # [N, 1]
    r_row = jnp.sum(xt * xt, axis=0, keepdims=True)                # [1, N]
    return jnp.maximum(r_col + r_row - 2.0 * g, 0.0)


def _cross_attention(h_a, h_b, mask, wq, wkv, h_dim):
    q = _leaky(jnp.dot(h_a, wq, preferred_element_type=jnp.float32))
    kv = jnp.dot(h_b, wkv, preferred_element_type=jnp.float32)     # fused K|V matmul
    k = _leaky(kv[:, :h_dim])
    v = kv[:, h_dim:]
    logits = mask * jnp.dot(q, k.T, preferred_element_type=jnp.float32) - 1000.0 * (1.0 - mask)
    logits = logits - jnp.max(logits, axis=-1, keepdims=True)
    ex = jnp.exp(logits)
    inv = pl.reciprocal(jnp.sum(ex, axis=-1, keepdims=True), approx=True)   # EUP slot
    return jnp.dot(ex * inv, v, preferred_element_type=jnp.float32)


def _side(coords, orig_coords, h, orig_feats, edge_feat, inv_sig, cross, w, out_dim):
    """One graph side: edge MLP + coords MLP + mean aggregation + node MLP."""
    n = coords.shape[0]
    e = n * n
    f32 = jnp.float32
    inv_n = 1.0 / n

    # Pairwise coordinate differences kept in (src, dst, 3) layout (never flattened to [E,3]);
    # one single EUP exp produces all 15 RBF distance features.
    diff = coords[:, None, :] - coords[None, :, :]                     # [n, n, 3]
    d2 = jnp.sum(diff * diff, axis=-1, keepdims=True)                  # [n, n, 1]
    dist = jnp.exp(-d2 * inv_sig).reshape(e, N_SIGMAS)                 # [E, 15]

    # First edge linear, decomposed over the [h_src | h_dst | edge_feat | dist] blocks; the
    # two h-dependent blocks come from ONE fused [N,H]x[H,2*OUT] matmul broadcast over edges.
    hsd = jnp.dot(h, w["w1_hsd"], preferred_element_type=f32)          # [N, 2*OUT]
    hs = hsd[:, :out_dim]
    hd = hsd[:, out_dim:]
    z = (jnp.broadcast_to(hs[:, None, :], (n, n, out_dim)).reshape(e, out_dim)
         + jnp.broadcast_to(hd[None, :, :], (n, n, out_dim)).reshape(e, out_dim)
         + jnp.dot(edge_feat, w["w1_e"], preferred_element_type=f32)
         + jnp.dot(dist, w["w1_d"], preferred_element_type=f32)
         + w["b1"])
    z = _leaky(z)                                                      # LN = Identity

    # Second edge linear fused with the coords-MLP hidden linear: z @ [w2 | w2@wc1].
    mc = jnp.dot(z, w["w2c"], preferred_element_type=f32)              # [E, 2*OUT]
    msg = mc[:, :out_dim] + w["b2"]                                    # [E, OUT]
    c = _leaky(mc[:, out_dim:] + w["bc1e"])                            # [E, OUT]

    # coords-MLP output column: VPU multiply + lane reduce, no 1-column MXU matmul.
    coef = jnp.sum(c * w["wc2r"], axis=-1, keepdims=True) + w["bc2"]   # [E, 1]

    # Mean over incoming edges == reduction over the src axis (no dense aggregation matrix,
    # no flattened [E,3] message tensor).
    aggr_msg = jnp.sum(msg.reshape(n, n, out_dim), axis=0) * inv_n     # [N, OUT]
    x_update = jnp.sum(coef.reshape(n, n, 1) * diff, axis=0) * inv_n   # [N, 3]
    x_evolved = (X_CONNECTION_INIT * orig_coords
                 + (1.0 - X_CONNECTION_INIT) * coords + x_update)

    # Node MLP: ONE matmul over the concatenated per-node activations.
    if cross is not None:
        nin = jnp.concatenate([h, aggr_msg, cross, orig_feats], axis=-1)
    else:                                                              # cross_B == 0: block dropped
        nin = jnp.concatenate([h, aggr_msg, orig_feats], axis=-1)
    acc = _leaky(jnp.dot(nin, w["nw1"], preferred_element_type=f32) + w["nb1"])
    upd = jnp.dot(acc, w["nw2"], preferred_element_type=f32) + w["nb2"]
    node = SKIP_WEIGHT_H * upd + (1.0 - SKIP_WEIGHT_H) * h             # invar_dim == out_dim config
    return x_evolved, node


# ----------------------------------------------------------------------------
# Wrapper-side weight fusion / packing (trace-time, tiny)
# ----------------------------------------------------------------------------
def _pack_slab(entries):
    """Pack 2D f32 tensors into one lane-dense slab; each block is 8-row aligned.
    Returns (slab, offsets) with offsets[name] = (row_off, rows, cols) as Python ints."""
    width = max(int(t.shape[1]) for _, t in entries)
    blocks, offsets, row = [], {}, 0
    for name, t in entries:
        r, c = int(t.shape[0]), int(t.shape[1])
        rp = ((r + 7) // 8) * 8
        blocks.append(jnp.pad(t.astype(jnp.float32), ((0, rp - r), (0, width - c))))
        offsets[name] = (row, r, c)
        row += rp
    return jnp.concatenate(blocks, axis=0), offsets


def _prep_side_weights(p, include_cross):
    hi = jax.lax.Precision.HIGHEST
    w2c1 = jnp.dot(p["w2"], p["wc1"], precision=hi)
    nw1_blocks = [p["nw1_h"], p["nw1_agg"]]
    if include_cross:
        nw1_blocks.append(p["nw1_cross"])
    nw1_blocks.append(p["nw1_orig"])
    return [
        ("w1_hsd", jnp.concatenate([p["w1_hs"], p["w1_hd"]], axis=1)),
        ("w1_e", p["w1_e"]),
        ("w1_d", p["w1_d"]),
        ("b1", p["b1"]),
        ("w2c", jnp.concatenate([p["w2"], w2c1], axis=1)),
        ("b2", p["b2"]),
        ("bc1e", jnp.dot(p["b2"], p["wc1"], precision=hi) + p["bc1"]),
        ("wc2r", p["wc2"].T),
        ("bc2", p["bc2"]),
        ("nw1", jnp.concatenate(nw1_blocks, axis=0)),
        ("nb1", p["nb1"]),
        ("nw2", p["nw2"]),
        ("nb2", p["nb2"]),
    ]


@jax.jit
def fine_grain_forward(coords_A, h_A, orig_feats_A, orig_coords_A, edge_feat_A,
                       coords_B, h_B, orig_feats_B, orig_coords_B, edge_feat_B,
                       mask, geom_target_A, geom_target_B, params):
    n_a, n_b = coords_A.shape[0], coords_B.shape[0]
    e_a, e_b = n_a * n_a, n_b * n_b
    h_dim = h_A.shape[1]
    orig_dim = orig_feats_A.shape[1]
    out_dim = params["A"]["w2"].shape[1]

    inv_sig = jnp.asarray([[1.0 / s for s in ALL_SIGMAS]], dtype=jnp.float32)

    # One lane-dense weight slab: collapses ~40 tiny weight DMAs into a single descriptor.
    entries = [("inv_sig", inv_sig),
               ("att_wq", params["wq"]),
               ("att_wkv", jnp.concatenate([params["wk"], params["wv"]], axis=1))]
    entries += [("A_" + k, v) for k, v in _prep_side_weights(params["A"], include_cross=True)]
    entries += [("B_" + k, v) for k, v in _prep_side_weights(params["B"], include_cross=False)]
    wslab, woff = _pack_slab(entries)

    # Per-side node-data slab: [coords | orig_coords | h | orig_feats].
    node_slab_A = jnp.concatenate([coords_A, orig_coords_A, h_A, orig_feats_A],
                                  axis=-1).astype(jnp.float32)
    node_slab_B = jnp.concatenate([coords_B, orig_coords_B, h_B, orig_feats_B],
                                  axis=-1).astype(jnp.float32)

    def kernel(na_ref, nb_ref, ea_ref, eb_ref, mask_ref, ga_ref, gb_ref, ws_ref,
               outa_ref, outb_ref, loss_ref):
        def W(name):
            o, r, c = woff[name]                       # static Python ints -> free ref views
            return ws_ref[pl.ds(o, r), pl.ds(0, c)]

        def unpack_nodes(ref):
            nd = ref[...]
            return (nd[:, 0:3], nd[:, 3:6],
                    nd[:, 6:6 + h_dim], nd[:, 6 + h_dim:6 + h_dim + orig_dim])

        coords_a, orig_coords_a, h_a, orig_a = unpack_nodes(na_ref)
        coords_b, orig_coords_b, h_b, orig_b = unpack_nodes(nb_ref)
        inv_sig_v = W("inv_sig")
        mask_v = mask_ref[...]

        # Cross attention: A attends over B; cross_B is identically zero (skipped).
        cross_a = _cross_attention(h_a, h_b, mask_v, W("att_wq"), W("att_wkv"), h_dim)

        def side_w(prefix):
            return {k: W(prefix + k) for k in _SIDE_SLAB_KEYS}

        x_ev_a, node_a = _side(coords_a, orig_coords_a, h_a, orig_a, ea_ref[...],
                               inv_sig_v, cross_a, side_w("A_"), out_dim)
        x_ev_b, node_b = _side(coords_b, orig_coords_b, h_b, orig_b, eb_ref[...],
                               inv_sig_v, None, side_w("B_"), out_dim)

        # Lane-dense packed outputs: [x_evolved | node_update] per side.
        outa_ref[...] = jnp.concatenate([x_ev_a, node_a], axis=-1)
        outb_ref[...] = jnp.concatenate([x_ev_b, node_b], axis=-1)

        # Geometry-regularization loss (Gram-identity pairwise distances, dense targets).
        d2a = _pair_sq_dists(x_ev_a)
        d2b = _pair_sq_dists(x_ev_b)
        ga = ga_ref[...]
        gb = gb_ref[...]
        loss_ref[0] = (jnp.sum((d2a - ga * ga) ** 2) + jnp.sum((d2b - gb * gb) ** 2))

    vmem = pl.BlockSpec(memory_space=pltpu.MemorySpace.VMEM)
    smem = pl.BlockSpec(memory_space=pltpu.MemorySpace.SMEM)

    # Scoped-VMEM budget sized to the live edge-stage temporaries (z / mc / msg / c / dist ...).
    est = 4 * (e_a + e_b) * (6 * 2 * out_dim + N_SIGMAS + 8) + (4 << 20)
    vmem_limit = int(min(max(est, 32 << 20), 100 << 20))

    out_a, out_b, loss = pl.pallas_call(
        kernel,
        out_shape=(jax.ShapeDtypeStruct((n_a, 3 + out_dim), jnp.float32),
                   jax.ShapeDtypeStruct((n_b, 3 + out_dim), jnp.float32),
                   jax.ShapeDtypeStruct((1,), jnp.float32)),
        in_specs=[vmem] * 8,
        out_specs=(vmem, vmem, smem),
        compiler_params=pltpu.CompilerParams(vmem_limit_bytes=vmem_limit),
    )(node_slab_A, node_slab_B, edge_feat_A.astype(jnp.float32),
      edge_feat_B.astype(jnp.float32), mask.astype(jnp.float32),
      geom_target_A.astype(jnp.float32), geom_target_B.astype(jnp.float32), wslab)

    x_evolved_A, node_upd_A = out_a[:, :3], out_a[:, 3:]
    x_evolved_B, node_upd_B = out_b[:, :3], out_b[:, 3:]
    trajectory = []  # save_trajectories = False
    # TODO(synk): geometry_regularization inner gradient-descent loop (geom_reg_steps) is
    # disabled in this configuration; only the loss_geometry_regularization term is computed.
    return x_evolved_A, node_upd_A, x_evolved_B, node_upd_B, trajectory, loss[0]


# ----------------------------------------------------------------------------
# Pure-JAX reference (mirrors the PyTorch forward for the same configuration)
# ----------------------------------------------------------------------------
def reference_forward(coords_A, h_A, orig_feats_A, orig_coords_A, edge_feat_A,
                      coords_B, h_B, orig_feats_B, orig_coords_B, edge_feat_B,
                      mask, geom_target_A, geom_target_B, params):
    def full_w1(p):
        return jnp.concatenate([p["w1_hs"], p["w1_hd"], p["w1_e"], p["w1_d"]], axis=0)

    def full_nw1(p):
        return jnp.concatenate([p["nw1_h"], p["nw1_agg"], p["nw1_cross"], p["nw1_orig"]], axis=0)

    def edge_side(coords, h, edge_feat, orig_coords, p, n):
        src = jnp.repeat(jnp.arange(n), n)
        dst = jnp.tile(jnp.arange(n), n)
        x_rel = coords[src] - coords[dst]
        d2 = jnp.sum(x_rel ** 2, axis=1, keepdims=True)
        dist = jnp.concatenate([jnp.exp(-d2 / s) for s in ALL_SIGMAS], axis=-1)
        edge_in = jnp.concatenate([h[src], h[dst], edge_feat, dist], axis=-1)
        z = _leaky(edge_in @ full_w1(p) + p["b1"])
        msg = z @ p["w2"] + p["b2"]
        c = _leaky(msg @ p["wc1"] + p["bc1"])
        coef = c @ p["wc2"] + p["bc2"]
        m = x_rel * coef
        agg = (dst[None, :] == jnp.arange(n)[:, None]).astype(jnp.float32) / n
        aggr_msg = agg @ msg
        x_update = agg @ m
        x_evolved = (X_CONNECTION_INIT * orig_coords + (1.0 - X_CONNECTION_INIT) * coords + x_update)
        return aggr_msg, x_evolved

    n_a, n_b = coords_A.shape[0], coords_B.shape[0]
    aggr_A, xe_A = edge_side(coords_A, h_A, edge_feat_A, orig_coords_A, params["A"], n_a)
    aggr_B, xe_B = edge_side(coords_B, h_B, edge_feat_B, orig_coords_B, params["B"], n_b)

    q = _leaky(h_A @ params["wq"])
    k = _leaky(h_B @ params["wk"])
    v = h_B @ params["wv"]
    a = mask * (q @ k.T) - 1000.0 * (1.0 - mask)
    p_att = jax.nn.softmax(a, axis=1)
    cross_A = p_att @ v
    cross_B = 0.0 * cross_A

    def node_side(h, aggr, cross, orig, p):
        x = jnp.concatenate([h, aggr, cross, orig], axis=-1)
        z = _leaky(x @ full_nw1(p) + p["nb1"])
        upd = z @ p["nw2"] + p["nb2"]
        return SKIP_WEIGHT_H * upd + (1.0 - SKIP_WEIGHT_H) * h

    nu_A = node_side(h_A, aggr_A, cross_A, orig_feats_A, params["A"])
    nu_B = node_side(h_B, aggr_B, cross_B, orig_feats_B, params["B"])

    def gloss(x, t):
        diff = x[:, None, :] - x[None, :, :]
        d2 = jnp.sum(diff ** 2, axis=-1)
        return jnp.sum((d2 - t ** 2) ** 2)

    loss = gloss(xe_A, geom_target_A) + gloss(xe_B, geom_target_B)
    return xe_A, nu_A, xe_B, nu_B, [], loss


# ----------------------------------------------------------------------------
# Deterministic parameter init (xavier_normal_ weights, zero biases), pre-split
# along the concat blocks so the wrapper can re-fuse them without slicing.
# ----------------------------------------------------------------------------
def _xavier(key, fan_in, fan_out):
    std = (2.0 / (fan_in + fan_out)) ** 0.5
    return (std * jax.random.normal(key, (fan_in, fan_out))).astype(jnp.float32)


def init_params(key, orig_dim, h_dim, out_dim, edge_dim):
    edge_in_dim = 2 * h_dim + edge_dim + N_SIGMAS
    node_in_dim = orig_dim + 2 * h_dim + out_dim
    ks = iter(jax.random.split(key, 32))

    def side():
        w1 = _xavier(next(ks), edge_in_dim, out_dim)
        nw1 = _xavier(next(ks), node_in_dim, h_dim)
        return dict(
            w1_hs=w1[:h_dim], w1_hd=w1[h_dim:2 * h_dim],
            w1_e=w1[2 * h_dim:2 * h_dim + edge_dim], w1_d=w1[2 * h_dim + edge_dim:],
            b1=jnp.zeros((1, out_dim), jnp.float32),
            w2=_xavier(next(ks), out_dim, out_dim), b2=jnp.zeros((1, out_dim), jnp.float32),
            wc1=_xavier(next(ks), out_dim, out_dim), bc1=jnp.zeros((1, out_dim), jnp.float32),
            wc2=_xavier(next(ks), out_dim, 1), bc2=jnp.zeros((1, 1), jnp.float32),
            nw1_h=nw1[:h_dim], nw1_agg=nw1[h_dim:h_dim + out_dim],
            nw1_cross=nw1[h_dim + out_dim:h_dim + out_dim + h_dim],
            nw1_orig=nw1[h_dim + out_dim + h_dim:],
            nb1=jnp.zeros((1, h_dim), jnp.float32),
            nw2=_xavier(next(ks), h_dim, out_dim), nb2=jnp.zeros((1, out_dim), jnp.float32),
        )

    params = {"A": side(), "B": side(),
              "wq": _xavier(next(ks), h_dim, h_dim),
              "wk": _xavier(next(ks), h_dim, h_dim),
              "wv": _xavier(next(ks), h_dim, h_dim)}
    return params


if __name__ == "__main__":
    N = 8            # nodes per graph (multiple of 8 keeps in-kernel reshapes tile-aligned)
    ORIG_DIM = 16    # orig_invar_feats_dim_h
    H_DIM = 32       # invar_feats_dim_h
    OUT_DIM = 32     # out_feats_dim_h (== H_DIM so the skip connection is active)
    EDGE_DIM = 8     # edge_feats_dim
    E = N * N

    root = jax.random.PRNGKey(0)
    kp, kd = jax.random.split(root)
    params = init_params(kp, ORIG_DIM, H_DIM, OUT_DIM, EDGE_DIM)

    dk = iter(jax.random.split(kd, 16))
    coords_A = jax.random.normal(next(dk), (N, 3), jnp.float32)
    coords_B = jax.random.normal(next(dk), (N, 3), jnp.float32)
    orig_coords_A = jax.random.normal(next(dk), (N, 3), jnp.float32)
    orig_coords_B = jax.random.normal(next(dk), (N, 3), jnp.float32)
    h_A = jax.random.normal(next(dk), (N, H_DIM), jnp.float32)
    h_B = jax.random.normal(next(dk), (N, H_DIM), jnp.float32)
    orig_feats_A = jax.random.normal(next(dk), (N, ORIG_DIM), jnp.float32)
    orig_feats_B = jax.random.normal(next(dk), (N, ORIG_DIM), jnp.float32)
    edge_feat_A = jax.random.normal(next(dk), (E, EDGE_DIM), jnp.float32)
    edge_feat_B = jax.random.normal(next(dk), (E, EDGE_DIM), jnp.float32)
    geom_target_A = jnp.abs(jax.random.normal(next(dk), (N, N), jnp.float32)) + 0.5
    geom_target_B = jnp.abs(jax.random.normal(next(dk), (N, N), jnp.float32)) + 0.5
    mask = (jnp.arange(N)[None, :] < N - 2).astype(jnp.float32) * jnp.ones((N, N), jnp.float32)

    args = (coords_A, h_A, orig_feats_A, orig_coords_A, edge_feat_A,
            coords_B, h_B, orig_feats_B, orig_coords_B, edge_feat_B,
            mask, geom_target_A, geom_target_B, params)

    out = fine_grain_forward(*args)
    out = jax.block_until_ready(out)
    x_evolved_A, node_upd_A, x_evolved_B, node_upd_B, trajectory, loss = out

    ref = reference_forward(*args)
    ref = jax.block_until_ready(ref)

    np.testing.assert_allclose(np.asarray(x_evolved_A), np.asarray(ref[0]), rtol=1e-2, atol=1e-2)
    np.testing.assert_allclose(np.asarray(node_upd_A), np.asarray(ref[1]), rtol=1e-2, atol=1e-2)
    np.testing.assert_allclose(np.asarray(x_evolved_B), np.asarray(ref[2]), rtol=1e-2, atol=1e-2)
    np.testing.assert_allclose(np.asarray(node_upd_B), np.asarray(ref[3]), rtol=1e-2, atol=1e-2)
    np.testing.assert_allclose(float(loss), float(ref[5]), rtol=1e-2, atol=1e-2)

    print("KERNEL_OK")
</pallas_src>

<mosaic_0001>
module attributes {stable_mosaic.version = 11 : i64} {
  func.func @kernel(%arg0: memref<8x54xf32, #tpu.memory_space<vmem>>, %arg1: memref<8x54xf32, #tpu.memory_space<vmem>>, %arg2: memref<64x8xf32, #tpu.memory_space<vmem>>, %arg3: memref<64x8xf32, #tpu.memory_space<vmem>>, %arg4: memref<8x8xf32, #tpu.memory_space<vmem>>, %arg5: memref<8x8xf32, #tpu.memory_space<vmem>>, %arg6: memref<8x8xf32, #tpu.memory_space<vmem>>, %arg7: memref<616x64xf32, #tpu.memory_space<vmem>>, %arg8: memref<8x35xf32, #tpu.memory_space<vmem>>, %arg9: memref<8x35xf32, #tpu.memory_space<vmem>>, %arg10: memref<1xf32, #tpu.memory_space<smem>>) attributes {dimension_semantics = [], scalar_prefetch = 0 : i64, scratch_operands = 0 : i64, tpu.core_type = #tpu.core_type<tc>} {
    %c0 = arith.constant 0 : index
    %c0_0 = arith.constant 0 : index
    %0 = vector.load %arg0[%c0, %c0_0] : memref<8x54xf32, #tpu.memory_space<vmem>>, vector<8x54xf32>
    %1 = vector.extract_strided_slice %0 {offsets = [0, 0], sizes = [8, 3], strides = [1, 1]} : vector<8x54xf32> to vector<8x3xf32>
    %2 = vector.extract_strided_slice %0 {offsets = [0, 3], sizes = [8, 3], strides = [1, 1]} : vector<8x54xf32> to vector<8x3xf32>
    %3 = vector.extract_strided_slice %0 {offsets = [0, 6], sizes = [8, 32], strides = [1, 1]} : vector<8x54xf32> to vector<8x32xf32>
    %4 = vector.extract_strided_slice %0 {offsets = [0, 38], sizes = [8, 16], strides = [1, 1]} : vector<8x54xf32> to vector<8x16xf32>
    %c0_1 = arith.constant 0 : index
    %c0_2 = arith.constant 0 : index
    %5 = vector.load %arg1[%c0_1, %c0_2] : memref<8x54xf32, #tpu.memory_space<vmem>>, vector<8x54xf32>
    %6 = vector.extract_strided_slice %5 {offsets = [0, 0], sizes = [8, 3], strides = [1, 1]} : vector<8x54xf32> to vector<8x3xf32>
    %7 = vector.extract_strided_slice %5 {offsets = [0, 3], sizes = [8, 3], strides = [1, 1]} : vector<8x54xf32> to vector<8x3xf32>
    %8 = vector.extract_strided_slice %5 {offsets = [0, 6], sizes = [8, 32], strides = [1, 1]} : vector<8x54xf32> to vector<8x32xf32>
    %9 = vector.extract_strided_slice %5 {offsets = [0, 38], sizes = [8, 16], strides = [1, 1]} : vector<8x54xf32> to vector<8x16xf32>
    %c0_3 = arith.constant 0 : index
    %c0_4 = arith.constant 0 : index
    %10 = vector.load %arg7[%c0_3, %c0_4] : memref<616x64xf32, #tpu.memory_space<vmem>>, vector<1x15xf32>
    %c0_5 = arith.constant 0 : index
    %c0_6 = arith.constant 0 : index
    %11 = vector.load %arg4[%c0_5, %c0_6] : memref<8x8xf32, #tpu.memory_space<vmem>>, vector<8x8xf32>
    %c8 = arith.constant 8 : index
    %c0_7 = arith.constant 0 : index
    %12 = vector.load %arg7[%c8, %c0_7] : memref<616x64xf32, #tpu.memory_space<vmem>>, vector<32x32xf32>
    %c40 = arith.constant 40 : index
    %c0_8 = arith.constant 0 : index
    %13 = vector.load %arg7[%c40, %c0_8] : memref<616x64xf32, #tpu.memory_space<vmem>>, vector<32x64xf32>
    %cst = arith.constant dense<0.000000e+00> : vector<8x32xf32>
    %14 = tpu.matmul %3, %12, %cst {dimension_numbers = #tpu.dot_dimension_numbers<[1], [0], [0], [1], [0, 0, 1, 1], [], []>} : vector<8x32xf32>, vector<32x32xf32>, vector<8x32xf32> -> vector<8x32xf32>
    %cst_9 = arith.constant 0.000000e+00 : f32
    %15 = vector.broadcast %cst_9 : f32 to vector<8x32xf32>
    %16 = arith.cmpf oge, %14, %15 : vector<8x32xf32>
    %cst_10 = arith.constant 0.00999999977 : f32
    %17 = vector.broadcast %cst_10 : f32 to vector<8x32xf32>
    %18 = arith.mulf %17, %14 : vector<8x32xf32>
    %19 = arith.select %16, %14, %18 : vector<8x32xi1>, vector<8x32xf32>
    %cst_11 = arith.constant dense<0.000000e+00> : vector<8x64xf32>
    %20 = tpu.matmul %8, %13, %cst_11 {dimension_numbers = #tpu.dot_dimension_numbers<[1], [0], [0], [1], [0, 0, 1, 1], [], []>} : vector<8x32xf32>, vector<32x64xf32>, vector<8x64xf32> -> vector<8x64xf32>
    %21 = vector.extract_strided_slice %20 {offsets = [0, 0], sizes = [8, 32], strides = [1, 1]} : vector<8x64xf32> to vector<8x32xf32>
    %cst_12 = arith.constant 0.000000e+00 : f32
    %22 = vector.broadcast %cst_12 : f32 to vector<8x32xf32>
    %23 = arith.cmpf oge, %21, %22 : vector<8x32xf32>
    %cst_13 = arith.constant 0.00999999977 : f32
    %24 = vector.broadcast %cst_13 : f32 to vector<8x32xf32>
    %25 = arith.mulf %24, %21 : vector<8x32xf32>
    %26 = arith.select %23, %21, %25 : vector<8x32xi1>, vector<8x32xf32>
    %27 = vector.extract_strided_slice %20 {offsets = [0, 32], sizes = [8, 32], strides = [1, 1]} : vector<8x64xf32> to vector<8x32xf32>
    %28 = tpu.transpose %26, [1, 0] : vector<8x32xf32> -> vector<32x8xf32>
    %cst_14 = arith.constant dense<0.000000e+00> : vector<8x8xf32>
    %29 = tpu.matmul %19, %28, %cst_14 {dimension_numbers = #tpu.dot_dimension_numbers<[1], [0], [0], [1], [0, 0, 1, 1], [], []>} : vector<8x32xf32>, vector<32x8xf32>, vector<8x8xf32> -> vector<8x8xf32>
    %30 = arith.mulf %11, %29 : vector<8x8xf32>
    %cst_15 = arith.constant 1.000000e+00 : f32
    %31 = vector.broadcast %cst_15 : f32 to vector<8x8xf32>
    %32 = arith.subf %31, %11 : vector<8x8xf32>
    %cst_16 = arith.constant 1.000000e+03 : f32
    %33 = vector.broadcast %cst_16 : f32 to vector<8x8xf32>
    %34 = arith.mulf %33, %32 : vector<8x8xf32>
    %35 = arith.subf %30, %34 : vector<8x8xf32>
    %cst_17 = arith.constant dense<0xFF800000> : vector<8xf32>
    %36 = vector.multi_reduction <maximumf>, %35, %cst_17 [1] : vector<8x8xf32> to vector<8xf32>
    %37 = vector.shape_cast %36 : vector<8xf32> to vector<8x1xf32>
    %38 = vector.broadcast %37 : vector<8x1xf32> to vector<8x8xf32>
    %39 = arith.subf %35, %38 : vector<8x8xf32>
    %40 = math.exp %39 : vector<8x8xf32>
    %cst_18 = arith.constant dense<0.000000e+00> : vector<8xf32>
    %41 = vector.multi_reduction <add>, %40, %cst_18 [1] : vector<8x8xf32> to vector<8xf32>
    %42 = vector.shape_cast %41 : vector<8xf32> to vector<8x1xf32>
    %43 = tpu.reciprocal %42 {approx = true} : vector<8x1xf32> -> vector<8x1xf32>
    %44 = vector.broadcast %43 : vector<8x1xf32> to vector<8x8xf32>
    %45 = arith.mulf %40, %44 : vector<8x8xf32>
    %cst_19 = arith.constant dense<0.000000e+00> : vector<8x32xf32>
    %46 = tpu.matmul %45, %27, %cst_19 {dimension_numbers = #tpu.dot_dimension_numbers<[1], [0], [0], [1], [0, 0, 1, 1], [], []>} : vector<8x8xf32>, vector<8x32xf32>, vector<8x32xf32> -> vector<8x32xf32>
    %c0_20 = arith.constant 0 : index
    %c0_21 = arith.constant 0 : index
    %47 = vector.load %arg2[%c0_20, %c0_21] : memref<64x8xf32, #tpu.memory_space<vmem>>, vector<64x8xf32>
    %c72 = arith.constant 72 : index
    %c0_22 = arith.constant 0 : index
    %48 = vector.load %arg7[%c72, %c0_22] : memref<616x64xf32, #tpu.memory_space<vmem>>, vector<32x64xf32>
    %c104 = arith.constant 104 : index
    %c0_23 = arith.constant 0 : index
    %49 = vector.load %arg7[%c104, %c0_23] : memref<616x64xf32, #tpu.memory_space<vmem>>, vector<8x32xf32>
    %c112 = arith.constant 112 : index
    %c0_24 = arith.constant 0 : index
    %50 = vector.load %arg7[%c112, %c0_24] : memref<616x64xf32, #tpu.memory_space<vmem>>, vector<15x32xf32>
    %c128 = arith.constant 128 : index
    %c0_25 = arith.constant 0 : index
    %51 = vector.load %arg7[%c128, %c0_25] : memref<616x64xf32, #tpu.memory_space<vmem>>, vector<1x32xf32>
    %c136 = arith.constant 136 : index
    %c0_26 = arith.constant 0 : index
    %52 = vector.load %arg7[%c136, %c0_26] : memref<616x64xf32, #tpu.memory_space<vmem>>, vector<32x64xf32>
    %c168 = arith.constant 168 : index
    %c0_27 = arith.constant 0 : index
    %53 = vector.load %arg7[%c168, %c0_27] : memref<616x64xf32, #tpu.memory_space<vmem>>, vector<1x32xf32>
    %c176 = arith.constant 176 : index
    %c0_28 = arith.constant 0 : index
    %54 = vector.load %arg7[%c176, %c0_28] : memref<616x64xf32, #tpu.memory_space<vmem>>, vector<1x32xf32>
    %c184 = arith.constant 184 : index
    %c0_29 = arith.constant 0 : index
    %55 = vector.load %arg7[%c184, %c0_29] : memref<616x64xf32, #tpu.memory_space<vmem>>, vector<1x32xf32>
    %c192 = arith.constant 192 : index
    %c0_30 = arith.constant 0 : index
    %56 = vector.load %arg7[%c192, %c0_30] : memref<616x64xf32, #tpu.memory_space<vmem>>, vector<1x1xf32>
    %c200 = arith.constant 200 : index
    %c0_31 = arith.constant 0 : index
    %57 = vector.load %arg7[%c200, %c0_31] : memref<616x64xf32, #tpu.memory_space<vmem>>, vector<112x32xf32>
    %c312 = arith.constant 312 : index
    %c0_32 = arith.constant 0 : index
    %58 = vector.load %arg7[%c312, %c0_32] : memref<616x64xf32, #tpu.memory_space<vmem>>, vector<1x32xf32>
    %c320 = arith.constant 320 : index
    %c0_33 = arith.constant 0 : index
    %59 = vector.load %arg7[%c320, %c0_33] : memref<616x64xf32, #tpu.memory_space<vmem>>, vector<32x32xf32>
    %c352 = arith.constant 352 : index
    %c0_34 = arith.constant 0 : index
    %60 = vector.load %arg7[%c352, %c0_34] : memref<616x64xf32, #tpu.memory_space<vmem>>, vector<1x32xf32>
    %61 = vector.shape_cast %1 : vector<8x3xf32> to vector<8x1x3xf32>
    %62 = vector.shape_cast %1 : vector<8x3xf32> to vector<1x8x3xf32>
    %63 = vector.broadcast %61 : vector<8x1x3xf32> to vector<8x8x3xf32>
    %64 = vector.broadcast %62 : vector<1x8x3xf32> to vector<8x8x3xf32>
    %65 = arith.subf %63, %64 : vector<8x8x3xf32>
    %66 = arith.mulf %65, %65 : vector<8x8x3xf32>
    %cst_35 = arith.constant dense<0.000000e+00> : vector<8x8xf32>
    %67 = vector.multi_reduction <add>, %66, %cst_35 [2] : vector<8x8x3xf32> to vector<8x8xf32>
    %68 = vector.shape_cast %67 : vector<8x8xf32> to vector<8x8x1xf32>
    %cst_36 = arith.constant 0.000000e+00 : f32
    %69 = vector.broadcast %cst_36 : f32 to vector<8x8x1xf32>
    %70 = arith.subf %69, %68 : vector<8x8x1xf32>
    %71 = vector.shape_cast %10 : vector<1x15xf32> to vector<1x1x15xf32>
    %72 = vector.broadcast %70 : vector<8x8x1xf32> to vector<8x8x15xf32>
    %73 = vector.broadcast %71 : vector<1x1x15xf32> to vector<8x8x15xf32>
    %74 = arith.mulf %72, %73 : vector<8x8x15xf32>
    %75 = math.exp %74 : vector<8x8x15xf32>
    %76 = vector.shape_cast %75 : vector<8x8x15xf32> to vector<64x15xf32>
    %cst_37 = arith.constant dense<0.000000e+00> : vector<8x64xf32>
    %77 = tpu.matmul %3, %48, %cst_37 {dimension_numbers = #tpu.dot_dimension_numbers<[1], [0], [0], [1], [0, 0, 1, 1], [], []>} : vector<8x32xf32>, vector<32x64xf32>, vector<8x64xf32> -> vector<8x64xf32>
    %78 = vector.extract_strided_slice %77 {offsets = [0, 0], sizes = [8, 32], strides = [1, 1]} : vector<8x64xf32> to vector<8x32xf32>
    %79 = vector.extract_strided_slice %77 {offsets = [0, 32], sizes = [8, 32], strides = [1, 1]} : vector<8x64xf32> to vector<8x32xf32>
    %80 = vector.shape_cast %78 : vector<8x32xf32> to vector<8x1x32xf32>
    %81 = vector.shape_cast %80 : vector<8x1x32xf32> to vector<8x1x32xf32>
    %82 = vector.broadcast %81 : vector<8x1x32xf32> to vector<8x8x32xf32>
    %83 = vector.shape_cast %82 : vector<8x8x32xf32> to vector<64x32xf32>
    %84 = vector.shape_cast %79 : vector<8x32xf32> to vector<1x8x32xf32>
    %85 = vector.shape_cast %84 : vector<1x8x32xf32> to vector<1x8x32xf32>
    %86 = vector.broadcast %85 : vector<1x8x32xf32> to vector<8x8x32xf32>
    %87 = vector.shape_cast %86 : vector<8x8x32xf32> to vector<64x32xf32>
    %88 = arith.addf %83, %87 : vector<64x32xf32>
    %cst_38 = arith.constant dense<0.000000e+00> : vector<64x32xf32>
    %89 = tpu.matmul %47, %49, %cst_38 {dimension_numbers = #tpu.dot_dimension_numbers<[1], [0], [0], [1], [0, 0, 1, 1], [], []>} : vector<64x8xf32>, vector<8x32xf32>, vector<64x32xf32> -> vector<64x32xf32>
    %90 = arith.addf %88, %89 : vector<64x32xf32>
    %cst_39 = arith.constant dense<0.000000e+00> : vector<64x32xf32>
    %91 = tpu.matmul %76, %50, %cst_39 {dimension_numbers = #tpu.dot_dimension_numbers<[1], [0], [0], [1], [0, 0, 1, 1], [], []>} : vector<64x15xf32>, vector<15x32xf32>, vector<64x32xf32> -> vector<64x32xf32>
    %92 = arith.addf %90, %91 : vector<64x32xf32>
    %93 = vector.broadcast %51 : vector<1x32xf32> to vector<64x32xf32>
    %94 = arith.addf %92, %93 : vector<64x32xf32>
    %cst_40 = arith.constant 0.000000e+00 : f32
    %95 = vector.broadcast %cst_40 : f32 to vector<64x32xf32>
    %96 = arith.cmpf oge, %94, %95 : vector<64x32xf32>
    %cst_41 = arith.constant 0.00999999977 : f32
    %97 = vector.broadcast %cst_41 : f32 to vector<64x32xf32>
    %98 = arith.mulf %97, %94 : vector<64x32xf32>
    %99 = arith.select %96, %94, %98 : vector<64x32xi1>, vector<64x32xf32>
    %cst_42 = arith.constant dense<0.000000e+00> : vector<64x64xf32>
    %100 = tpu.matmul %99, %52, %cst_42 {dimension_numbers = #tpu.dot_dimension_numbers<[1], [0], [0], [1], [0, 0, 1, 1], [], []>} : vector<64x32xf32>, vector<32x64xf32>, vector<64x64xf32> -> vector<64x64xf32>
    %101 = vector.extract_strided_slice %100 {offsets = [0, 0], sizes = [64, 32], strides = [1, 1]} : vector<64x64xf32> to vector<64x32xf32>
    %102 = vector.broadcast %53 : vector<1x32xf32> to vector<64x32xf32>
    %103 = arith.addf %101, %102 : vector<64x32xf32>
    %104 = vector.extract_strided_slice %100 {offsets = [0, 32], sizes = [64, 32], strides = [1, 1]} : vector<64x64xf32> to vector<64x32xf32>
    %105 = vector.broadcast %54 : vector<1x32xf32> to vector<64x32xf32>
    %106 = arith.addf %104, %105 : vector<64x32xf32>
    %cst_43 = arith.constant 0.000000e+00 : f32
    %107 = vector.broadcast %cst_43 : f32 to vector<64x32xf32>
    %108 = arith.cmpf oge, %106, %107 : vector<64x32xf32>
    %cst_44 = arith.constant 0.00999999977 : f32
    %109 = vector.broadcast %cst_44 : f32 to vector<64x32xf32>
    %110 = arith.mulf %109, %106 : vector<64x32xf32>
    %111 = arith.select %108, %106, %110 : vector<64x32xi1>, vector<64x32xf32>
    %112 = vector.broadcast %55 : vector<1x32xf32> to vector<64x32xf32>
    %113 = arith.mulf %111, %112 : vector<64x32xf32>
    %cst_45 = arith.constant dense<0.000000e+00> : vector<64xf32>
    %114 = vector.multi_reduction <add>, %113, %cst_45 [1] : vector<64x32xf32> to vector<64xf32>
    %115 = vector.shape_cast %114 : vector<64xf32> to vector<64x1xf32>
    %116 = vector.broadcast %56 : vector<1x1xf32> to vector<64x1xf32>
    %117 = arith.addf %115, %116 : vector<64x1xf32>
    %118 = vector.shape_cast %103 : vector<64x32xf32> to vector<8x8x32xf32>
    %cst_46 = arith.constant dense<0.000000e+00> : vector<8x32xf32>
    %119 = vector.multi_reduction <add>, %118, %cst_46 [0] : vector<8x8x32xf32> to vector<8x32xf32>
    %cst_47 = arith.constant 1.250000e-01 : f32
    %120 = vector.broadcast %cst_47 : f32 to vector<8x32xf32>
    %121 = arith.mulf %119, %120 : vector<8x32xf32>
    %122 = vector.shape_cast %117 : vector<64x1xf32> to vector<8x8x1xf32>
    %123 = vector.broadcast %122 : vector<8x8x1xf32> to vector<8x8x3xf32>
    %124 = arith.mulf %123, %65 : vector<8x8x3xf32>
    %cst_48 = arith.constant dense<0.000000e+00> : vector<8x3xf32>
    %125 = vector.multi_reduction <add>, %124, %cst_48 [0] : vector<8x8x3xf32> to vector<8x3xf32>
    %cst_49 = arith.constant 1.250000e-01 : f32
    %126 = vector.broadcast %cst_49 : f32 to vector<8x3xf32>
    %127 = arith.mulf %125, %126 : vector<8x3xf32>
    %cst_50 = arith.constant 2.500000e-01 : f32
    %128 = vector.broadcast %cst_50 : f32 to vector<8x3xf32>
    %129 = arith.mulf %128, %2 : vector<8x3xf32>
    %cst_51 = arith.constant 7.500000e-01 : f32
    %130 = vector.broadcast %cst_51 : f32 to vector<8x3xf32>
    %131 = arith.mulf %130, %1 : vector<8x3xf32>
    %132 = arith.addf %129, %131 : vector<8x3xf32>
    %133 = arith.addf %132, %127 : vector<8x3xf32>
    %134 = tpu.concatenate %3, %121, %46, %4 in 1 : vector<8x32xf32>, vector<8x32xf32>, vector<8x32xf32>, vector<8x16xf32> -> vector<8x112xf32>
    %cst_52 = arith.constant dense<0.000000e+00> : vector<8x32xf32>
    %135 = tpu.matmul %134, %57, %cst_52 {dimension_numbers = #tpu.dot_dimension_numbers<[1], [0], [0], [1], [0, 0, 1, 1], [], []>} : vector<8x112xf32>, vector<112x32xf32>, vector<8x32xf32> -> vector<8x32xf32>
    %136 = vector.broadcast %58 : vector<1x32xf32> to vector<8x32xf32>
    %137 = arith.addf %135, %136 : vector<8x32xf32>
    %cst_53 = arith.constant 0.000000e+00 : f32
    %138 = vector.broadcast %cst_53 : f32 to vector<8x32xf32>
    %139 = arith.cmpf oge, %137, %138 : vector<8x32xf32>
    %cst_54 = arith.constant 0.00999999977 : f32
    %140 = vector.broadcast %cst_54 : f32 to vector<8x32xf32>
    %141 = arith.mulf %140, %137 : vector<8x32xf32>
    %142 = arith.select %139, %137, %141 : vector<8x32xi1>, vector<8x32xf32>
    %cst_55 = arith.constant dense<0.000000e+00> : vector<8x32xf32>
    %143 = tpu.matmul %142, %59, %cst_55 {dimension_numbers = #tpu.dot_dimension_numbers<[1], [0], [0], [1], [0, 0, 1, 1], [], []>} : vector<8x32xf32>, vector<32x32xf32>, vector<8x32xf32> -> vector<8x32xf32>
    %144 = vector.broadcast %60 : vector<1x32xf32> to vector<8x32xf32>
    %145 = arith.addf %143, %144 : vector<8x32xf32>
    %cst_56 = arith.constant 5.000000e-01 : f32
    %146 = vector.broadcast %cst_56 : f32 to vector<8x32xf32>
    %147 = arith.mulf %146, %145 : vector<8x32xf32>
    %cst_57 = arith.constant 5.000000e-01 : f32
    %148 = vector.broadcast %cst_57 : f32 to vector<8x32xf32>
    %149 = arith.mulf %148, %3 : vector<8x32xf32>
    %150 = arith.addf %147, %149 : vector<8x32xf32>
    %c0_58 = arith.constant 0 : index
    %c0_59 = arith.constant 0 : index
    %151 = vector.load %arg3[%c0_58, %c0_59] : memref<64x8xf32, #tpu.memory_space<vmem>>, vector<64x8xf32>
    %c360 = arith.constant 360 : index
    %c0_60 = arith.constant 0 : index
    %152 = vector.load %arg7[%c360, %c0_60] : memref<616x64xf32, #tpu.memory_space<vmem>>, vector<32x64xf32>
    %c392 = arith.constant 392 : index
    %c0_61 = arith.constant 0 : index
    %153 = vector.load %arg7[%c392, %c0_61] : memref<616x64xf32, #tpu.memory_space<vmem>>, vector<8x32xf32>
    %c400 = arith.constant 400 : index
    %c0_62 = arith.constant 0 : index
    %154 = vector.load %arg7[%c400, %c0_62] : memref<616x64xf32, #tpu.memory_space<vmem>>, vector<15x32xf32>
    %c416 = arith.constant 416 : index
    %c0_63 = arith.constant 0 : index
    %155 = vector.load %arg7[%c416, %c0_63] : memref<616x64xf32, #tpu.memory_space<vmem>>, vector<1x32xf32>
    %c424 = arith.constant 424 : index
    %c0_64 = arith.constant 0 : index
    %156 = vector.load %arg7[%c424, %c0_64] : memref<616x64xf32, #tpu.memory_space<vmem>>, vector<32x64xf32>
    %c456 = arith.constant 456 : index
    %c0_65 = arith.constant 0 : index
    %157 = vector.load %arg7[%c456, %c0_65] : memref<616x64xf32, #tpu.memory_space<vmem>>, vector<1x32xf32>
    %c464 = arith.constant 464 : index
    %c0_66 = arith.constant 0 : index
    %158 = vector.load %arg7[%c464, %c0_66] : memref<616x64xf32, #tpu.memory_space<vmem>>, vector<1x32xf32>
    %c472 = arith.constant 472 : index
    %c0_67 = arith.constant 0 : index
    %159 = vector.load %arg7[%c472, %c0_67] : memref<616x64xf32, #tpu.memory_space<vmem>>, vector<1x32xf32>
    %c480 = arith.constant 480 : index
    %c0_68 = arith.constant 0 : index
    %160 = vector.load %arg7[%c480, %c0_68] : memref<616x64xf32, #tpu.memory_space<vmem>>, vector<1x1xf32>
    %c488 = arith.constant 488 : index
    %c0_69 = arith.constant 0 : index
    %161 = vector.load %arg7[%c488, %c0_69] : memref<616x64xf32, #tpu.memory_space<vmem>>, vector<80x32xf32>
    %c568 = arith.constant 568 : index
    %c0_70 = arith.constant 0 : index
    %162 = vector.load %arg7[%c568, %c0_70] : memref<616x64xf32, #tpu.memory_space<vmem>>, vector<1x32xf32>
    %c576 = arith.constant 576 : index
    %c0_71 = arith.constant 0 : index
    %163 = vector.load %arg7[%c576, %c0_71] : memref<616x64xf32, #tpu.memory_space<vmem>>, vector<32x32xf32>
    %c608 = arith.constant 608 : index
    %c0_72 = arith.constant 0 : index
    %164 = vector.load %arg7[%c608, %c0_72] : memref<616x64xf32, #tpu.memory_space<vmem>>, vector<1x32xf32>
    %165 = vector.shape_cast %6 : vector<8x3xf32> to vector<8x1x3xf32>
    %166 = vector.shape_cast %6 : vector<8x3xf32> to vector<1x8x3xf32>
    %167 = vector.broadcast %165 : vector<8x1x3xf32> to vector<8x8x3xf32>
    %168 = vector.broadcast %166 : vector<1x8x3xf32> to vector<8x8x3xf32>
    %169 = arith.subf %167, %168 : vector<8x8x3xf32>
    %170 = arith.mulf %169, %169 : vector<8x8x3xf32>
    %cst_73 = arith.constant dense<0.000000e+00> : vector<8x8xf32>
    %171 = vector.multi_reduction <add>, %170, %cst_73 [2] : vector<8x8x3xf32> to vector<8x8xf32>
    %172 = vector.shape_cast %171 : vector<8x8xf32> to vector<8x8x1xf32>
    %cst_74 = arith.constant 0.000000e+00 : f32
    %173 = vector.broadcast %cst_74 : f32 to vector<8x8x1xf32>
    %174 = arith.subf %173, %172 : vector<8x8x1xf32>
    %175 = vector.shape_cast %10 : vector<1x15xf32> to vector<1x1x15xf32>
    %176 = vector.broadcast %174 : vector<8x8x1xf32> to vector<8x8x15xf32>
    %177 = vector.broadcast %175 : vector<1x1x15xf32> to vector<8x8x15xf32>
    %178 = arith.mulf %176, %177 : vector<8x8x15xf32>
    %179 = math.exp %178 : vector<8x8x15xf32>
    %180 = vector.shape_cast %179 : vector<8x8x15xf32> to vector<64x15xf32>
    %cst_75 = arith.constant dense<0.000000e+00> : vector<8x64xf32>
    %181 = tpu.matmul %8, %152, %cst_75 {dimension_numbers = #tpu.dot_dimension_numbers<[1], [0], [0], [1], [0, 0, 1, 1], [], []>} : vector<8x32xf32>, vector<32x64xf32>, vector<8x64xf32> -> vector<8x64xf32>
    %182 = vector.extract_strided_slice %181 {offsets = [0, 0], sizes = [8, 32], strides = [1, 1]} : vector<8x64xf32> to vector<8x32xf32>
    %183 = vector.extract_strided_slice %181 {offsets = [0, 32], sizes = [8, 32], strides = [1, 1]} : vector<8x64xf32> to vector<8x32xf32>
    %184 = vector.shape_cast %182 : vector<8x32xf32> to vector<8x1x32xf32>
    %185 = vector.shape_cast %184 : vector<8x1x32xf32> to vector<8x1x32xf32>
    %186 = vector.broadcast %185 : vector<8x1x32xf32> to vector<8x8x32xf32>
    %187 = vector.shape_cast %186 : vector<8x8x32xf32> to vector<64x32xf32>
    %188 = vector.shape_cast %183 : vector<8x32xf32> to vector<1x8x32xf32>
    %189 = vector.shape_cast %188 : vector<1x8x32xf32> to vector<1x8x32xf32>
    %190 = vector.broadcast %189 : vector<1x8x32xf32> to vector<8x8x32xf32>
    %191 = vector.shape_cast %190 : vector<8x8x32xf32> to vector<64x32xf32>
    %192 = arith.addf %187, %191 : vector<64x32xf32>
    %cst_76 = arith.constant dense<0.000000e+00> : vector<64x32xf32>
    %193 = tpu.matmul %151, %153, %cst_76 {dimension_numbers = #tpu.dot_dimension_numbers<[1], [0], [0], [1], [0, 0, 1, 1], [], []>} : vector<64x8xf32>, vector<8x32xf32>, vector<64x32xf32> -> vector<64x32xf32>
    %194 = arith.addf %192, %193 : vector<64x32xf32>
    %cst_77 = arith.constant dense<0.000000e+00> : vector<64x32xf32>
    %195 = tpu.matmul %180, %154, %cst_77 {dimension_numbers = #tpu.dot_dimension_numbers<[1], [0], [0], [1], [0, 0, 1, 1], [], []>} : vector<64x15xf32>, vector<15x32xf32>, vector<64x32xf32> -> vector<64x32xf32>
    %196 = arith.addf %194, %195 : vector<64x32xf32>
    %197 = vector.broadcast %155 : vector<1x32xf32> to vector<64x32xf32>
    %198 = arith.addf %196, %197 : vector<64x32xf32>
    %cst_78 = arith.constant 0.000000e+00 : f32
    %199 = vector.broadcast %cst_78 : f32 to vector<64x32xf32>
    %200 = arith.cmpf oge, %198, %199 : vector<64x32xf32>
    %cst_79 = arith.constant 0.00999999977 : f32
    %201 = vector.broadcast %cst_79 : f32 to vector<64x32xf32>
    %202 = arith.mulf %201, %198 : vector<64x32xf32>
    %203 = arith.select %200, %198, %202 : vector<64x32xi1>, vector<64x32xf32>
    %cst_80 = arith.constant dense<0.000000e+00> : vector<64x64xf32>
    %204 = tpu.matmul %203, %156, %cst_80 {dimension_numbers = #tpu.dot_dimension_numbers<[1], [0], [0], [1], [0, 0, 1, 1], [], []>} : vector<64x32xf32>, vector<32x64xf32>, vector<64x64xf32> -> vector<64x64xf32>
    %205 = vector.extract_strided_slice %204 {offsets = [0, 0], sizes = [64, 32], strides = [1, 1]} : vector<64x64xf32> to vector<64x32xf32>
    %206 = vector.broadcast %157 : vector<1x32xf32> to vector<64x32xf32>
    %207 = arith.addf %205, %206 : vector<64x32xf32>
    %208 = vector.extract_strided_slice %204 {offsets = [0, 32], sizes = [64, 32], strides = [1, 1]} : vector<64x64xf32> to vector<64x32xf32>
    %209 = vector.broadcast %158 : vector<1x32xf32> to vector<64x32xf32>
    %210 = arith.addf %208, %209 : vector<64x32xf32>
    %cst_81 = arith.constant 0.000000e+00 : f32
    %211 = vector.broadcast %cst_81 : f32 to vector<64x32xf32>
    %212 = arith.cmpf oge, %210, %211 : vector<64x32xf32>
    %cst_82 = arith.constant 0.00999999977 : f32
    %213 = vector.broadcast %cst_82 : f32 to vector<64x32xf32>
    %214 = arith.mulf %213, %210 : vector<64x32xf32>
    %215 = arith.select %212, %210, %214 : vector<64x32xi1>, vector<64x32xf32>
    %216 = vector.broadcast %159 : vector<1x32xf32> to vector<64x32xf32>
    %217 = arith.mulf %215, %216 : vector<64x32xf32>
    %cst_83 = arith.constant dense<0.000000e+00> : vector<64xf32>
    %218 = vector.multi_reduction <add>, %217, %cst_83 [1] : vector<64x32xf32> to vector<64xf32>
    %219 = vector.shape_cast %218 : vector<64xf32> to vector<64x1xf32>
    %220 = vector.broadcast %160 : vector<1x1xf32> to vector<64x1xf32>
    %221 = arith.addf %219, %220 : vector<64x1xf32>
    %222 = vector.shape_cast %207 : vector<64x32xf32> to vector<8x8x32xf32>
    %cst_84 = arith.constant dense<0.000000e+00> : vector<8x32xf32>
    %223 = vector.multi_reduction <add>, %222, %cst_84 [0] : vector<8x8x32xf32> to vector<8x32xf32>
    %cst_85 = arith.constant 1.250000e-01 : f32
    %224 = vector.broadcast %cst_85 : f32 to vector<8x32xf32>
    %225 = arith.mulf %223, %224 : vector<8x32xf32>
    %226 = vector.shape_cast %221 : vector<64x1xf32> to vector<8x8x1xf32>
    %227 = vector.broadcast %226 : vector<8x8x1xf32> to vector<8x8x3xf32>
    %228 = arith.mulf %227, %169 : vector<8x8x3xf32>
    %cst_86 = arith.constant dense<0.000000e+00> : vector<8x3xf32>
    %229 = vector.multi_reduction <add>, %228, %cst_86 [0] : vector<8x8x3xf32> to vector<8x3xf32>
    %cst_87 = arith.constant 1.250000e-01 : f32
    %230 = vector.broadcast %cst_87 : f32 to vector<8x3xf32>
    %231 = arith.mulf %229, %230 : vector<8x3xf32>
    %cst_88 = arith.constant 2.500000e-01 : f32
    %232 = vector.broadcast %cst_88 : f32 to vector<8x3xf32>
    %233 = arith.mulf %232, %7 : vector<8x3xf32>
    %cst_89 = arith.constant 7.500000e-01 : f32
    %234 = vector.broadcast %cst_89 : f32 to vector<8x3xf32>
    %235 = arith.mulf %234, %6 : vector<8x3xf32>
    %236 = arith.addf %233, %235 : vector<8x3xf32>
    %237 = arith.addf %236, %231 : vector<8x3xf32>
    %238 = tpu.concatenate %8, %225, %9 in 1 : vector<8x32xf32>, vector<8x32xf32>, vector<8x16xf32> -> vector<8x80xf32>
    %cst_90 = arith.constant dense<0.000000e+00> : vector<8x32xf32>
    %239 = tpu.matmul %238, %161, %cst_90 {dimension_numbers = #tpu.dot_dimension_numbers<[1], [0], [0], [1], [0, 0, 1, 1], [], []>} : vector<8x80xf32>, vector<80x32xf32>, vector<8x32xf32> -> vector<8x32xf32>
    %240 = vector.broadcast %162 : vector<1x32xf32> to vector<8x32xf32>
    %241 = arith.addf %239, %240 : vector<8x32xf32>
    %cst_91 = arith.constant 0.000000e+00 : f32
    %242 = vector.broadcast %cst_91 : f32 to vector<8x32xf32>
    %243 = arith.cmpf oge, %241, %242 : vector<8x32xf32>
    %cst_92 = arith.constant 0.00999999977 : f32
    %244 = vector.broadcast %cst_92 : f32 to vector<8x32xf32>
    %245 = arith.mulf %244, %241 : vector<8x32xf32>
    %246 = arith.select %243, %241, %245 : vector<8x32xi1>, vector<8x32xf32>
    %cst_93 = arith.constant dense<0.000000e+00> : vector<8x32xf32>
    %247 = tpu.matmul %246, %163, %cst_93 {dimension_numbers = #tpu.dot_dimension_numbers<[1], [0], [0], [1], [0, 0, 1, 1], [], []>} : vector<8x32xf32>, vector<32x32xf32>, vector<8x32xf32> -> vector<8x32xf32>
    %248 = vector.broadcast %164 : vector<1x32xf32> to vector<8x32xf32>
    %249 = arith.addf %247, %248 : vector<8x32xf32>
    %cst_94 = arith.constant 5.000000e-01 : f32
    %250 = vector.broadcast %cst_94 : f32 to vector<8x32xf32>
    %251 = arith.mulf %250, %249 : vector<8x32xf32>
    %cst_95 = arith.constant 5.000000e-01 : f32
    %252 = vector.broadcast %cst_95 : f32 to vector<8x32xf32>
    %253 = arith.mulf %252, %8 : vector<8x32xf32>
    %254 = arith.addf %251, %253 : vector<8x32xf32>
    %255 = tpu.concatenate %133, %150 in 1 : vector<8x3xf32>, vector<8x32xf32> -> vector<8x35xf32>
    %c0_96 = arith.constant 0 : index
    %c0_97 = arith.constant 0 : index
    %256 = vector.load %arg8[%c0_96, %c0_97] : memref<8x35xf32, #tpu.memory_space<vmem>>, vector<8x35xf32>
    tpu.vector_store %arg8[%c0_96, %c0_97], %255 {strides = array<i32>} : memref<8x35xf32, #tpu.memory_space<vmem>>, vector<8x35xf32>,
    %257 = tpu.concatenate %237, %254 in 1 : vector<8x3xf32>, vector<8x32xf32> -> vector<8x35xf32>
    %c0_98 = arith.constant 0 : index
    %c0_99 = arith.constant 0 : index
    %258 = vector.load %arg9[%c0_98, %c0_99] : memref<8x35xf32, #tpu.memory_space<vmem>>, vector<8x35xf32>
    tpu.vector_store %arg9[%c0_98, %c0_99], %257 {strides = array<i32>} : memref<8x35xf32, #tpu.memory_space<vmem>>, vector<8x35xf32>,
    %259 = tpu.transpose %133, [1, 0] : vector<8x3xf32> -> vector<3x8xf32>
    %cst_100 = arith.constant dense<0.000000e+00> : vector<8x8xf32>
    %260 = tpu.matmul %133, %259, %cst_100 {dimension_numbers = #tpu.dot_dimension_numbers<[1], [0], [0], [1], [0, 0, 1, 1], [], []>} : vector<8x3xf32>, vector<3x8xf32>, vector<8x8xf32> -> vector<8x8xf32>
    %261 = arith.mulf %133, %133 : vector<8x3xf32>
    %cst_101 = arith.constant dense<0.000000e+00> : vector<8xf32>
    %262 = vector.multi_reduction <add>, %261, %cst_101 [1] : vector<8x3xf32> to vector<8xf32>
    %263 = vector.shape_cast %262 : vector<8xf32> to vector<8x1xf32>
    %264 = arith.mulf %259, %259 : vector<3x8xf32>
    %cst_102 = arith.constant dense<0.000000e+00> : vector<8xf32>
    %265 = vector.multi_reduction <add>, %264, %cst_102 [0] : vector<3x8xf32> to vector<8xf32>
    %266 = vector.shape_cast %265 : vector<8xf32> to vector<1x8xf32>
    %267 = vector.broadcast %263 : vector<8x1xf32> to vector<8x8xf32>
    %268 = vector.broadcast %266 : vector<1x8xf32> to vector<8x8xf32>
    %269 = arith.addf %267, %268 : vector<8x8xf32>
    %cst_103 = arith.constant 2.000000e+00 : f32
    %270 = vector.broadcast %cst_103 : f32 to vector<8x8xf32>
    %271 = arith.mulf %270, %260 : vector<8x8xf32>
    %272 = arith.subf %269, %271 : vector<8x8xf32>
    %cst_104 = arith.constant 0.000000e+00 : f32
    %273 = vector.broadcast %cst_104 : f32 to vector<8x8xf32>
    %274 = arith.maximumf %272, %273 : vector<8x8xf32>
    %275 = tpu.transpose %237, [1, 0] : vector<8x3xf32> -> vector<3x8xf32>
    %cst_105 = arith.constant dense<0.000000e+00> : vector<8x8xf32>
    %276 = tpu.matmul %237, %275, %cst_105 {dimension_numbers = #tpu.dot_dimension_numbers<[1], [0], [0], [1], [0, 0, 1, 1], [], []>} : vector<8x3xf32>, vector<3x8xf32>, vector<8x8xf32> -> vector<8x8xf32>
    %277 = arith.mulf %237, %237 : vector<8x3xf32>
    %cst_106 = arith.constant dense<0.000000e+00> : vector<8xf32>
    %278 = vector.multi_reduction <add>, %277, %cst_106 [1] : vector<8x3xf32> to vector<8xf32>
    %279 = vector.shape_cast %278 : vector<8xf32> to vector<8x1xf32>
    %280 = arith.mulf %275, %275 : vector<3x8xf32>
    %cst_107 = arith.constant dense<0.000000e+00> : vector<8xf32>
    %281 = vector.multi_reduction <add>, %280, %cst_107 [0] : vector<3x8xf32> to vector<8xf32>
    %282 = vector.shape_cast %281 : vector<8xf32> to vector<1x8xf32>
    %283 = vector.broadcast %279 : vector<8x1xf32> to vector<8x8xf32>
    %284 = vector.broadcast %282 : vector<1x8xf32> to vector<8x8xf32>
    %285 = arith.addf %283, %284 : vector<8x8xf32>
    %cst_108 = arith.constant 2.000000e+00 : f32
    %286 = vector.broadcast %cst_108 : f32 to vector<8x8xf32>
    %287 = arith.mulf %286, %276 : vector<8x8xf32>
    %288 = arith.subf %285, %287 : vector<8x8xf32>
    %cst_109 = arith.constant 0.000000e+00 : f32
    %289 = vector.broadcast %cst_109 : f32 to vector<8x8xf32>
    %290 = arith.maximumf %288, %289 : vector<8x8xf32>
    %c0_110 = arith.constant 0 : index
    %c0_111 = arith.constant 0 : index
    %291 = vector.load %arg5[%c0_110, %c0_111] : memref<8x8xf32, #tpu.memory_space<vmem>>, vector<8x8xf32>
    %c0_112 = arith.constant 0 : index
    %c0_113 = arith.constant 0 : index
    %292 = vector.load %arg6[%c0_112, %c0_113] : memref<8x8xf32, #tpu.memory_space<vmem>>, vector<8x8xf32>
    %293 = arith.mulf %291, %291 : vector<8x8xf32>
    %294 = arith.subf %274, %293 : vector<8x8xf32>
    %295 = arith.mulf %294, %294 : vector<8x8xf32>
    %296 = vector.shape_cast %295 : vector<8x8xf32> to vector<1x8x8xf32>
    %cst_114 = arith.constant dense<0.000000e+00> : vector<1xf32>
    %297 = vector.multi_reduction <add>, %296, %cst_114 [1, 2] : vector<1x8x8xf32> to vector<1xf32>
    %298 = vector.shape_cast %297 : vector<1xf32> to vector<1x1x1xf32>
    %299 = vector.extract %298[0, 0, 0] : f32 from vector<1x1x1xf32>
    %300 = arith.mulf %292, %292 : vector<8x8xf32>
    %301 = arith.subf %290, %300 : vector<8x8xf32>
    %302 = arith.mulf %301, %301 : vector<8x8xf32>
    %303 = vector.shape_cast %302 : vector<8x8xf32> to vector<1x8x8xf32>
    %cst_115 = arith.constant dense<0.000000e+00> : vector<1xf32>
    %304 = vector.multi_reduction <add>, %303, %cst_115 [1, 2] : vector<1x8x8xf32> to vector<1xf32>
    %305 = vector.shape_cast %304 : vector<1xf32> to vector<1x1x1xf32>
    %306 = vector.extract %305[0, 0, 0] : f32 from vector<1x1x1xf32>
    %307 = arith.addf %299, %306 : f32
    %c0_116 = arith.constant 0 : index
    %308 = memref.load %arg10[%c0_116] : memref<1xf32, #tpu.memory_space<smem>>
    memref.store %307, %arg10[%c0_116] : memref<1xf32, #tpu.memory_space<smem>>
    return
  }
}

</mosaic_0001>

<bundles_post_ra>
// kernel: fine_grain_forward.1
= control target key start
LH: loop header
LB: loop body
LE: loop exit
PB: predicated region body
PF: predicated region fallthrough
CT: control target
= control target key end

     0   :  { %s3667_s17 = smov 122   ;;  %v4689_v2 = vmov 0.0   ;;  %s4678_s0 = inlined_call_operand.vmem [shape: f32[8,54], index: 0, kind: input, shape index: {}]   ;;  %s4679_s1 = inlined_call_operand.vmem [shape: f32[8,54], index: 1, kind: input, shape index: {}]   ;;  %s4680_s2 = inlined_call_operand.vmem [shape: f32[64,8], index: 2, kind: input, shape index: {}]   ;;  %s4681_s3 = inlined_call_operand.vmem [shape: f32[64,8], index: 3, kind: input, shape index: {}]   ;;  %s4682_s4 = inlined_call_operand.vmem [shape: f32[8,8], index: 4, kind: input, shape index: {}]   ;;  %s4683_s5 = inlined_call_operand.vmem [shape: f32[8,8], index: 5, kind: input, shape index: {}]   ;;  %s4684_s6 = inlined_call_operand.vmem [shape: f32[8,8], index: 6, kind: input, shape index: {}]   ;;  %s4685_s7 = inlined_call_operand.vmem [shape: f32[616,64], index: 7, kind: input, shape index: {}]   ;;  %s4686_s8 = inlined_call_operand.vmem [shape: f32[8,35], index: 8, kind: output, shape index: {0}]   ;;  %s4687_s9 = inlined_call_operand.vmem [shape: f32[8,35], index: 9, kind: output, shape index: {1}]   ;;  %s4688_s10 = inlined_call_operand.hbm [shape: f32[1], index: 10, kind: output, shape index: {2}]  }
   0x1   :  { %v3738_v0 = vld [vmem:[%s4679_s1] sm:$0xff]  ;;  %3369 = vmatprep.subr.mxu1 %v4689_v2  ;;  %v43_v3 = vld [vmem:[%s4685_s7 + $0x38] sm:$0xff]  ;;  %3358 = vmatprep.subr.mxu0 %v4689_v2  ;;  %v42_v6 = vld [vmem:[%s4685_s7 + $0x30] sm:$0xff] }
   0x2   :  { %v44_v1 = vld [vmem:[%s4685_s7 + $0x40] sm:$0xff]  ;;  %125 = vrot.lane.b32.xlu0 %v3738_v0, %s3667_s17  ;;  %v39_v7 = vld [vmem:[%s4685_s7 + $0x18] sm:$0xff] }
   0x3   :  { %v40_v4 = vld [vmem:[%s4685_s7 + $0x20] sm:$0xff]  ;;  %3370 = vmatpush3.msra.mxu1 %v44_v1 }
   0x4   :  { %v3755_v5 = vld [vmem:[%s4678_s0] sm:$0xff]  ;;  %3371 = vmatprep.subr.mxu1 %v4689_v2  ;;  %3359 = vmatpush3.msra.mxu0 %v40_v4 }
   0x5   :  { %16 = vsyncpa [#allocation3], 0  ;;  %3372 = vmatpush3.msra.mxu1 %v43_v3  ;;  %3360 = vmatprep.subr.mxu0 %v4689_v2  ;;  %v41_v8 = vld [vmem:[%s4685_s7 + $0x28] sm:$0xff]  ;;  %v38_v9 = vld [vmem:[%s4685_s7 + $0x10] sm:$0xff]  ;;  %vm3669_vm0 = vmmov 0   ;;  %vm48_vm1 = vcmask 261120   ;;  %v419_v13 = vlaneseq  ;;  %v415_v56 = vcombine.high %v3755_v5, %v3755_v5 }
   0x6   :  { %46 = vrot.lane.b32.xlu0 %v3755_v5, %s3667_s17  ;;  %3373 = vmatprep.subr.mxu1 %v4689_v2  ;;  %v37_v10 = vld [vmem:[%s4685_s7 + $0x8] sm:$0xff]  ;;  %v3670_v14 = vmov 1966171168   ;;  %vm520_vm2 = vcmask 23552   ;;  %v382_v33 = vld [vmem:[%s4685_s7 + $0x60] sm:$0xff]  ;;  %v381_v35 = vld [vmem:[%s4685_s7 + $0x58] sm:$0xff] }
   0x7   :  { %3374 = vmatpush3.msra.mxu1 %v42_v6  ;;  %3361 = vmatpush3.msra.mxu0 %v39_v7  ;;  %v417_v15 = vunpack.c.l.s4 %v3670_v14  ;;  %v420_v16 = vshrl.u32 %v419_v13, 7  ;;  %v380_v36 = vld [vmem:[%s4685_s7 + $0x50] sm:$0xff]  ;;  %v379_v37 = vld [vmem:[%s4685_s7 + $0x48] sm:$0xff]  ;;  %v36_v38 = vld [vmem:[%s4682_s4] sm:$0xff]  ;;  %vm282_vm5 = vcmask 64512   ;;  %s3671_s4 = smov 96  }
   0x8   :  { %3375 = vmatprep.subr.mxu1 %v4689_v2  ;;  %3377 = vmatprep.mubr.msk.f32.mxu1 %vm3669_vm0, %v4689_v2  ;;  %v279_v39 = vsub.f32 1.0, %v36_v38  ;;  %vm914_vm6 = vcmask 1046528   ;;  %vm889_vm7 = vcmask 121856   ;;  %s3672_s20 = smov 58   ;;  %s3673_s11 = smov 32  }
   0x9   :  { %3376 = vmatpush3.msra.mxu1 %v41_v8  ;;  %3362 = vmatprep.subr.mxu0 %v4689_v2  ;;  %v418_v17 = vunpack.c.0.s8 %v417_v15  ;;  %v3803_v20 = vsub.s32 0, %v420_v16  ;;  %s3674_s12 = smov 64   ;;  %s3676_s26 = smov 26  }
   0xa   :  { %3363 = vmatpush3.msra.mxu0 %v38_v9  ;;  %3366 = vmatprep.mubr.msk.f32.mxu0 %vm3669_vm0, %v4689_v2  ;;  %v280_v43 = vmul.f32 1000.0, %v279_v39  ;;  %v384_v39 = vld [vmem:[%s4685_s7 + $0x70] sm:$0xff] }
   0xb   :  { %3364 = vmatprep.subr.mxu0 %v4689_v2  ;;  %3385 = vmatprep.subr.mxu1 %v4689_v2  ;;  %v3799_v18 = vsub.s32 %v418_v17, %v420_v16 }
   0xc   :  { %3365 = vmatpush3.msra.mxu0 %v37_v10 }
   0xd   :  { %3380 = vmatprep.subr.mxu0 %v4689_v2  ;;  %v422_v19 = vrot.slane %v3755_v5, %v3799_v18  ;;  %v429_v60 = vrot.slane %v415_v56, %v3799_v18 }
   0xf   :  { %v438_v21 = vrot.slane %v422_v19, %v3799_v18  ;;  %v430_v40 = vcombine.high %v422_v19, %v422_v19  ;;  %v445_v62 = vrot.slane %v429_v60, %v3799_v18  ;;  %v431_v6 = vcombine.high %v429_v60, %v429_v60 }
  0x11   :  { %v467_v22 = vrot.slane %v438_v21, %v3803_v20  ;;  %v460_v41 = vcombine.high %v438_v21, %v438_v21  ;;  %v452_v42 = vrot.slane %v430_v40, %v3799_v18  ;;  %v483_v4 = vrot.slane %v445_v62, %v3803_v20 }
  0x12   :  { %v459_v8 = vrot.slane %v431_v6, %v3799_v18  ;;  %v461_v14 = vcombine.high %v445_v62, %v445_v62 }
  0x13   :  { %v3808_v23 = vsub.f32 %v467_v22, %v3755_v5  ;;  %v471_v44 = vrot.slane %v452_v42, %v3803_v20  ;;  %v475_v45 = vrot.slane %v460_v41, %v3803_v20  ;;  %v462_v46 = vcombine.high %v452_v42, %v452_v42 }
  0x14   :  { %v3878_v7 = vsub.f32 %v483_v4, %v3755_v5  ;;  %v487_v13 = vrot.slane %v459_v8, %v3803_v20  ;;  %v491_v17 = vrot.slane %v461_v14, %v3803_v20  ;;  %v463_v21 = vcombine.high %v459_v8, %v459_v8 }
  0x15   :  { %v512_v24 = vmul.f32 %v3808_v23, %v3808_v23  ;;  %v3847_v49 = vsub.f32 %v471_v44, %v3755_v5  ;;  %v3854_v53 = vsub.f32 %v475_v45, %v3755_v5  ;;  %v479_v54 = vrot.slane %v462_v46, %v3803_v20 }
  0x16   :  { %v516_v10 = vmul.f32 %v3878_v7, %v3878_v7  ;;  %v3886_v15 = vsub.f32 %v487_v13, %v3755_v5  ;;  %v3893_v22 = vsub.f32 %v491_v17, %v3755_v5 }
  0x17   :  { %v521_v25 = vsel %vm520_vm2, %v512_v24, 0.0  ;;  %v513_v52 = vmul.f32 %v3847_v49, %v3847_v49  ;;  %v514_v58 = vmul.f32 %v3854_v53, %v3854_v53  ;;  %v3865_v59 = vsub.f32 %v479_v54, %v3755_v5 }
  0x18   :  { %v533_v16 = vsel %vm520_vm2, %v516_v10, 0.0  ;;  %v517_v19 = vmul.f32 %v3886_v15, %v3886_v15  ;;  %v495_v24 = vrot.slane %v463_v21, %v3803_v20 }
  0x19   :  { %v524_v57 = vsel %vm520_vm2, %v513_v52, 0.0  ;;  %v527_v1 = vsel %vm520_vm2, %v514_v58, 0.0  ;;  %v515_v3 = vmul.f32 %v3865_v59, %v3865_v59 }
  0x1b   :  { %v530_v9 = vsel %vm520_vm2, %v515_v3, 0.0 }
  0x25   :  { %522 = vadd.xlane.f32.xlu0 %v521_v25  ;;  %v536_v25 = vsel %vm520_vm2, %v517_v19, 0.0 }
  0x74   :  { %v3787_v11 = vpop.permute.xlu0 %125 }
  0x75   :  { %4696 = vst [vmem:[#allocation5_spill] sm:$0xff] %v3787_v11  ;;  %3378 = vmatmul.mubr.msk.f32.vlgmr.msra.gmra.mxu1 %vm48_vm1, %v3787_v11 }
  0x76   :  { %3387 = vmatprep.mubr.msk.f32.mxu1 %vm3669_vm0, %v4689_v2 }
  0x78   :  { %v3793_v12 = vpop.permute.xlu0 %46 }
  0x79   :  { %3367 = vmatmul.mubr.msk.f32.vlgmr.msra.gmra.mxu0 %vm48_vm1, %v3793_v12 }
  0x7a   :  { %3382 = vmatprep.mubr.msk.f32.mxu0 %vm3669_vm0, %v4689_v2 }
 0x135   :  { %v3813_v26 = vpop.f32.mrf.mxu1 }
 0x136   :  { %vm199_vm3 = vcmp.ge.f32.partialorder %v3813_v26, 0.0  ;;  %v200_v27 = vmul.f32 0.01, %v3813_v26 }
 0x137   :  { %v3379_v28 = vpop.f32.mrf.mxu1 }
 0x138   :  { %v201_v29 = vsel %vm199_vm3, %v3813_v26, %v200_v27  ;;  %v518_v27 = vmul.f32 %v3893_v22, %v3893_v22  ;;  %v523_v28 = vpop.xlane.xlu0 %522  ;;  %vm1437_vm3 = vcmask 523264  }
 0x139   :  { %v117_v30 = vpop.f32.mrf.mxu0  ;;  %3381 = vmatpush3.xpose.msk.msra.mxu0 %vm48_vm1, %v201_v29  ;;  %v3900_v29 = vsub.f32 %v495_v24, %v3755_v5 }
 0x13a   :  { %vm121_vm4 = vcmp.ge.f32.partialorder %v117_v30, 0.0  ;;  %v122_v31 = vmul.f32 0.01, %v117_v30  ;;  %3390 = vmatprep.subr.mxu0 %v4689_v2 }
 0x13b   :  { %v3368_v32 = vpop.f32.mrf.mxu0 }
 0x13c   :  { %v123_v34 = vsel %vm121_vm4, %v117_v30, %v122_v31  ;;  %v545_v30 = vsub.f32 0.0, %v523_v28  ;;  %v3905_v31 = vld [vmem:[%s4685_s7] ss:$0 sm:$0xff]  ;;  %v539_v32 = vsel %vm520_vm2, %v518_v27, 0.0  ;;  %vm1439_vm4 = vcmask 785408  }
 0x13d   :  { %3383 = vmatmul.mubr.msk.f32.vlgmr.msra.gmra.mxu0 %vm48_vm1, %v123_v34 }
 0x13e   :  { %3391 = vmatpush3.msra.mxu0 %v382_v33  ;;  %3398 = vmatprep.mubr.msk.f32.mxu0 %vm3669_vm0, %v4689_v2  ;;  %v519_v33 = vmul.f32 %v3900_v29, %v3900_v29  ;;  %v557_v34 = vmul.f32 %v3905_v31, %v545_v30 }
 0x13f   :  { %3392 = vmatprep.subr.mxu0 %v4689_v2 }
 0x140   :  { %3393 = vmatpush3.msra.mxu0 %v381_v35  ;;  %v542_v35 = vsel %vm520_vm2, %v519_v33, 0.0 }
 0x141   :  { %3394 = vmatprep.subr.mxu0 %v4689_v2 }
 0x142   :  { %3395 = vmatpush3.msra.mxu0 %v380_v36  ;;  %v565_v36 = vmul.f32 1.442695, %v557_v34 }
 0x143   :  { %3396 = vmatprep.subr.mxu0 %v4689_v2 }
 0x144   :  { %3397 = vmatpush3.msra.mxu0 %v379_v37  ;;  %3619 = vpow2.f32 %v565_v36 }
 0x145   :  { %3399 = vmatmul.mubr.msk.f32.vlgmr.msra.gmra.mxu0 %vm48_vm1, %v3793_v12 }
 0x151   :  { %v3620_v37 = vpop.eup %3619 }
 0x152   :  { %3419 = vmatprep.mubr.msk.f32.mxu0 %vm889_vm7, %v3620_v37 }
 0x1fd   :  { %v274_v47 = vpop.f32.mrf.mxu0 }
 0x1fe   :  { %v278_v48 = vmul.f32 %v274_v47, %v36_v38  ;;  %v385_v38 = vld [vmem:[%s4685_s7 + $0x78] sm:$0x7f] }
 0x1ff   :  { %v3384_v50 = vpop.f32.mrf.mxu0  ;;  %3415 = vmatprep.subr.msk.mxu0 %vm914_vm6, %v385_v38 }
 0x200   :  { %v3849_v51 = vsub.f32 %v278_v48, %v280_v43  ;;  %3416 = vmatpush3.msk.msra.mxu0 %vm914_vm6, %v385_v38  ;;  %v371_v38 = vld [vmem:[%s4680_s2] sm:$0xff] }
 0x201   :  { %3417 = vmatprep.subr.mxu0 %v384_v39 }
 0x202   :  { %v283_v55 = vsel %vm282_vm5, %v3849_v51, -inf  ;;  %3418 = vmatpush3.msra.mxu0 %v384_v39  ;;  %v372_v39 = vld [vmem:[%s4680_s2 + $0x8] sm:$0xff] }
 0x203   :  { %284 = vmax.xlane.f32.xlu1 %v283_v55  ;;  %3451 = vmatprep.subr.mxu0 %v4689_v2 }
 0x205   :  { %v3868_v61 = vpop.f32.mrf.mxu0 }
 0x206   :  { %741 = vrot.lane.b32.xlu0 %v3868_v61, %s3671_s4 }
 0x207   :  { %v3400_v63 = vpop.f32.mrf.mxu0  ;;  %525 = vadd.xlane.f32.xlu1 %v524_v57 }
 0x20a   :  { %1433 = vrot.lane.b32.xlu0 %v3755_v5, %s3672_s20  ;;  %v405_v5 = vld [vmem:[%s4685_s7 + $0x118] sm:$0xff]  ;;  %s3677_s20 = smov 3  }
 0x20b   :  { %528 = vadd.xlane.f32.xlu1 %v527_v1 }
 0x20f   :  { %531 = vadd.xlane.f32.xlu1 %v530_v9 }
 0x213   :  { %534 = vadd.xlane.f32.xlu1 %v533_v16 }
 0x217   :  { %537 = vadd.xlane.f32.xlu1 %v536_v25 }
 0x21b   :  { %540 = vadd.xlane.f32.xlu1 %v539_v32 }
 0x21f   :  { %543 = vadd.xlane.f32.xlu1 %v542_v35 }
 0x28c   :  { %v285_v40 = vpop.xlane.xlu1 %284 }
 0x28d   :  { %v286_v41 = vsub.f32 %v3849_v51, %v285_v40  ;;  %v373_v40 = vld [vmem:[%s4680_s2 + $0x10] sm:$0xff] }
 0x28f   :  { %v287_v42 = vmul.f32 1.442695, %v286_v41  ;;  %v374_v41 = vld [vmem:[%s4680_s2 + $0x18] sm:$0xff] }
 0x290   :  { %v526_v43 = vpop.xlane.xlu1 %525 }
 0x291   :  { %3621 = vpow2.f32 %v287_v42  ;;  %v546_v44 = vsub.f32 0.0, %v526_v43  ;;  %v375_v42 = vld [vmem:[%s4680_s2 + $0x20] sm:$0xff]  ;;  %v376_v43 = vld [vmem:[%s4680_s2 + $0x28] sm:$0xff] }
 0x293   :  { %v558_v45 = vmul.f32 %v3905_v31, %v546_v44  ;;  %v377_v44 = vld [vmem:[%s4680_s2 + $0x30] sm:$0xff] }
 0x294   :  { %v529_v46 = vpop.xlane.xlu1 %528 }
 0x295   :  { %v567_v47 = vmul.f32 1.442695, %v558_v45  ;;  %v547_v48 = vsub.f32 0.0, %v529_v46  ;;  %v378_v45 = vld [vmem:[%s4680_s2 + $0x38] sm:$0xff]  ;;  %v390_v46 = vld [vmem:[%s4685_s7 + $0xa0] sm:$0xff] }
 0x297   :  { %3623 = vpow2.f32 %v567_v47  ;;  %v559_v50 = vmul.f32 %v3905_v31, %v547_v48  ;;  %v389_v47 = vld [vmem:[%s4685_s7 + $0x98] sm:$0xff]  ;;  %v388_v48 = vld [vmem:[%s4685_s7 + $0x90] sm:$0xff] }
 0x298   :  { %v532_v52 = vpop.xlane.xlu1 %531 }
 0x299   :  { %v569_v54 = vmul.f32 1.442695, %v559_v50  ;;  %v548_v55 = vsub.f32 0.0, %v532_v52  ;;  %v387_v50 = vld [vmem:[%s4685_s7 + $0x88] sm:$0xff]  ;;  %v659_v52 = vrot.slane %v3868_v61, %v3799_v18 }
 0x29b   :  { %3625 = vpow2.f32 %v569_v54  ;;  %v560_v56 = vmul.f32 %v3905_v31, %v548_v55  ;;  %v652_v54 = vcombine.high %v3868_v61, %v3868_v61  ;;  %v667_v55 = vcombine.high %v659_v52, %v659_v52 }
 0x29c   :  { %v535_v57 = vpop.xlane.xlu1 %534 }
 0x29d   :  { %v571_v51 = vmul.f32 1.442695, %v560_v56  ;;  %v549_v58 = vsub.f32 0.0, %v535_v57  ;;  %v666_v56 = vrot.slane %v652_v54, %v3799_v18  ;;  %v689_v57 = vrot.slane %v667_v55, %v3799_v18 }
 0x29e   :  { %v3622_v60 = vpop.eup %3621 }
 0x29f   :  { %v289_v62 = vsel %vm282_vm5, %v3622_v60, 0.0  ;;  %3627 = vpow2.f32 %v571_v51  ;;  %v561_v63 = vmul.f32 %v3905_v31, %v549_v58  ;;  %v668_v58 = vcombine.high %v666_v56, %v666_v56 }
 0x2a0   :  { %290 = vadd.xlane.f32.xlu1 %v289_v62  ;;  %v538_v1 = vpop.xlane.xlu1 %537  ;;  %v742_v62 = vpop.permute.xlu0 %741 }
 0x2a1   :  { %v573_v3 = vmul.f32 1.442695, %v561_v63  ;;  %v550_v4 = vsub.f32 0.0, %v538_v1  ;;  %v708_v1 = vrot.slane %v689_v57, %v3803_v20 }
 0x2a3   :  { %3629 = vpow2.f32 %v573_v3  ;;  %v562_v6 = vmul.f32 %v3905_v31, %v550_v4  ;;  %v699_v3 = vcombine.high %v689_v57, %v689_v57 }
 0x2a4   :  { %v3624_v8 = vpop.eup %3623  ;;  %v541_v9 = vpop.xlane.xlu1 %540 }
 0x2a5   :  { %v575_v10 = vmul.f32 1.442695, %v562_v6  ;;  %v551_v13 = vsub.f32 0.0, %v541_v9  ;;  %3420 = vmatmul.mubr.msk.f32.vlgmr.msra.gmra.mxu0 %vm889_vm7, %v3624_v8  ;;  %v745_v8 = vadd.f32 %v742_v62, %v708_v1  ;;  %v696_v9 = vrot.slane %v668_v58, %v3799_v18 }
 0x2a7   :  { %3631 = vpow2.f32 %v575_v10  ;;  %v563_v14 = vmul.f32 %v3905_v31, %v551_v13 }
 0x2a8   :  { %v3626_v16 = vpop.eup %3625  ;;  %v544_v17 = vpop.xlane.xlu1 %543 }
 0x2a9   :  { %v577_v19 = vmul.f32 1.442695, %v563_v14  ;;  %v552_v21 = vsub.f32 0.0, %v544_v17  ;;  %3422 = vmatprep.mubr.msk.f32.mxu0 %vm889_vm7, %v3626_v16 }
 0x2ab   :  { %3633 = vpow2.f32 %v577_v19  ;;  %v564_v24 = vmul.f32 %v3905_v31, %v552_v21  ;;  %v716_v19 = vrot.slane %v699_v3, %v3803_v20  ;;  %v4007_v21 = vld [vmem:[%s4685_s7 + $0x80] ss:$0 sm:$0xff] }
 0x2ac   :  { %v3628_v25 = vpop.eup %3627 }
 0x2ad   :  { %v579_v27 = vmul.f32 1.442695, %v564_v24  ;;  %3423 = vmatmul.mubr.msk.f32.gmra.mxu0 %vm889_vm7, %v3628_v25  ;;  %v682_v25 = vrot.slane %v666_v56, %v3799_v18 }
 0x2af   :  { %3635 = vpow2.f32 %v579_v27 }
 0x2b0   :  { %v3630_v28 = vpop.eup %3629 }
 0x2b1   :  { %295 = vrot.lane.b32.xlu1 %v3813_v26, %s3671_s4  ;;  %3425 = vmatprep.mubr.msk.f32.mxu0 %vm889_vm7, %v3630_v28  ;;  %v383_v26 = vld [vmem:[%s4685_s7 + $0x68] sm:$0xff] }
 0x2b4   :  { %v3632_v30 = vpop.eup %3631 }
 0x2b5   :  { %3426 = vmatmul.mubr.msk.f32.gmra.mxu0 %vm889_vm7, %v3632_v30  ;;  %v747_v30 = vadd.f32 %v742_v62, %v716_v19 }
 0x2b8   :  { %v3634_v32 = vpop.eup %3633 }
 0x2b9   :  { %3428 = vmatprep.mubr.msk.f32.mxu0 %vm889_vm7, %v3634_v32  ;;  %v700_v32 = vcombine.high %v696_v9, %v696_v9 }
 0x2bc   :  { %v3636_v33 = vpop.eup %3635 }
 0x2bd   :  { %3429 = vmatmul.mubr.msk.f32.gmra.mxu0 %vm889_vm7, %v3636_v33 }
 0x2be   :  { %3479 = vmatprep.mubr.msk.f32.mxu0 %vm3669_vm0, %v4689_v2 }
 0x329   :  { %v291_v34 = vpop.xlane.xlu1 %290 }
 0x32a   :  { %3637 = vrcp.f32 %v291_v34 }
 0x32d   :  { %v296_v35 = vpop.permute.xlu1 %295 }
 0x32e   :  { %3386 = vmatpush3.msra.mxu1 %v296_v35 }
 0x32f   :  { %3401 = vmatprep.subr.mxu1 %v383_v26 }
 0x337   :  { %v3638_v36 = vpop.eup %3637 }
 0x338   :  { %v293_v37 = vmul.f32 %v3638_v36, %v3622_v60  ;;  %v675_v60 = vrot.slane %v659_v52, %v3799_v18 }
 0x33a   :  { %3388 = vmatmul.mubr.msk.f32.vlgmr.msra.gmra.mxu1 %vm282_vm5, %v293_v37  ;;  %v704_v61 = vrot.slane %v675_v60, %v3803_v20  ;;  %v697_v14 = vcombine.high %v675_v60, %v675_v60 }
 0x33b   :  { %3402 = vmatpush3.msra.mxu1 %v383_v26  ;;  %3403 = vmatprep.mubr.msk.f32.mxu1 %vm282_vm5, %v371_v38  ;;  %v724_v38 = vrot.slane %v696_v9, %v3803_v20 }
 0x33c   :  { %3431 = vmatprep.subr.mxu1 %v390_v46  ;;  %v744_v17 = vadd.f32 %v742_v62, %v704_v61  ;;  %v712_v26 = vrot.slane %v697_v14, %v3803_v20 }
 0x33e   :  { %3404 = vmatmul.mubr.msk.f32.vlgmr.msra.gmra.mxu1 %vm282_vm5, %v372_v39 }
 0x33f   :  { %3406 = vmatprep.mubr.msk.f32.mxu1 %vm282_vm5, %v373_v40  ;;  %3432 = vmatpush3.msra.mxu1 %v390_v46  ;;  %v746_v40 = vadd.f32 %v742_v62, %v712_v26  ;;  %v749_v46 = vadd.f32 %v742_v62, %v724_v38 }
 0x340   :  { %3433 = vmatprep.subr.mxu1 %v389_v47 }
 0x341   :  { %3434 = vmatpush3.msra.mxu1 %v389_v47  ;;  %v732_v47 = vrot.slane %v700_v32, %v3803_v20 }
 0x342   :  { %3407 = vmatmul.mubr.msk.f32.gmra.mxu1 %vm282_vm5, %v374_v41  ;;  %3435 = vmatprep.subr.mxu1 %v388_v48 }
 0x343   :  { %3409 = vmatprep.mubr.msk.f32.mxu1 %vm282_vm5, %v375_v42  ;;  %3436 = vmatpush3.msra.mxu1 %v388_v48  ;;  %v720_v42 = vrot.slane %v682_v25, %v3803_v20 }
 0x344   :  { %3437 = vmatprep.subr.mxu1 %v387_v50 }
 0x345   :  { %3438 = vmatpush3.msra.mxu1 %v387_v50  ;;  %v748_v54 = vadd.f32 %v742_v62, %v720_v42 }
 0x346   :  { %3410 = vmatmul.mubr.msk.f32.gmra.mxu1 %vm282_vm5, %v376_v43  ;;  %3482 = vmatprep.subr.mxu1 %v4689_v2  ;;  %v698_v43 = vcombine.high %v682_v25, %v682_v25 }
 0x347   :  { %3412 = vmatprep.mubr.msk.f32.mxu1 %vm282_vm5, %v377_v44 }
 0x348   :  { %v728_v1 = vrot.slane %v698_v43, %v3803_v20 }
 0x34a   :  { %3413 = vmatmul.mubr.msk.f32.gmra.mxu1 %vm282_vm5, %v378_v45  ;;  %v750_v14 = vadd.f32 %v742_v62, %v728_v1 }
 0x365   :  { %v3421_v51 = vpop.f32.mrf.mxu0 }
 0x367   :  { %v984_v4 = vpop.f32.mrf.mxu0 }
 0x36d   :  { %v3424_v10 = vpop.f32.mrf.mxu0 }
 0x36f   :  { %v994_v33 = vpop.f32.mrf.mxu0 }
 0x375   :  { %v3427_v39 = vpop.f32.mrf.mxu0 }
 0x3fa   :  { %v3998_v63 = vpop.f32.mrf.mxu1 }
 0x3fc   :  { %v3389_v6 = vpop.f32.mrf.mxu1 }
 0x3fd   :  { %v751_v6 = vadd.f32 %v742_v62, %v732_v47  ;;  %v404_v47 = vld [vmem:[%s4685_s7 + $0x110] sm:$0xff] }
 0x3fe   :  { %v3405_v13 = vpop.f32.mrf.mxu1 }
 0x3ff   :  { %v882_v16 = vadd.f32 %v3405_v13, %v745_v8 }
 0x400   :  { %v842_v24 = vpop.f32.mrf.mxu1 }
 0x401   :  { %v1024_v27 = vadd.f32 %v3421_v51, %v882_v16  ;;  %v881_v28 = vadd.f32 %v842_v24, %v744_v17  ;;  %v1004_v51 = vpop.f32.mrf.mxu0 }
 0x402   :  { %v3408_v34 = vpop.f32.mrf.mxu1 }
 0x403   :  { %v1036_v35 = vadd.f32 %v4007_v21, %v1024_v27  ;;  %v1023_v36 = vadd.f32 %v984_v4, %v881_v28  ;;  %v884_v37 = vadd.f32 %v3408_v34, %v747_v30  ;;  %v3430_v61 = vpop.f32.mrf.mxu0 }
 0x404   :  { %v852_v41 = vpop.f32.mrf.mxu1 }
 0x405   :  { %v1035_v44 = vadd.f32 %v4007_v21, %v1023_v36  ;;  %v1026_v45 = vadd.f32 %v3424_v10, %v884_v37  ;;  %vm1044_vm8 = vcmp.ge.f32.partialorder %v1036_v35, 0.0  ;;  %v1052_v48 = vmul.f32 0.01, %v1036_v35 }
 0x406   :  { %v883_v50 = vadd.f32 %v852_v41, %v746_v40  ;;  %v3411_v52 = vpop.f32.mrf.mxu1 }
 0x407   :  { %v1038_v55 = vadd.f32 %v4007_v21, %v1026_v45  ;;  %v886_v56 = vadd.f32 %v3411_v52, %v749_v46  ;;  %vm1043_vm9 = vcmp.ge.f32.partialorder %v1035_v44, 0.0  ;;  %v1051_v57 = vmul.f32 0.01, %v1035_v44  ;;  %v407_v45 = vld [vmem:[%s4685_s7 + $0x128] sm:$0xff]  ;;  %v406_v46 = vld [vmem:[%s4685_s7 + $0x120] sm:$0xff]  ;;  %v401_v52 = vld [vmem:[%s4685_s7 + $0xf8] sm:$0xff] }
 0x408   :  { %v1025_v58 = vadd.f32 %v994_v33, %v883_v50  ;;  %v862_v60 = vpop.f32.mrf.mxu1  ;;  %v1060_v13 = vsel %vm1044_vm8, %v1036_v35, %v1052_v48  ;;  %v1014_v33 = vpop.f32.mrf.mxu0  ;;  %v403_v48 = vld [vmem:[%s4685_s7 + $0x108] sm:$0xff]  ;;  %v402_v50 = vld [vmem:[%s4685_s7 + $0x100] sm:$0xff]  ;;  %vm1445_vm8 = vcmask 916480  }
 0x409   :  { %v1028_v3 = vadd.f32 %v3427_v39, %v886_v56  ;;  %v885_v4 = vadd.f32 %v862_v60, %v748_v54  ;;  %v1059_v8 = vsel %vm1043_vm9, %v1035_v44, %v1051_v57  ;;  %v1054_v16 = vmul.f32 0.01, %v1038_v55  ;;  %v400_v54 = vld [vmem:[%s4685_s7 + $0xf0] sm:$0xff]  ;;  %v398_v56 = vld [vmem:[%s4685_s7 + $0xe0] sm:$0xff] }
 0x40a   :  { %v1037_v9 = vadd.f32 %v4007_v21, %v1025_v58  ;;  %v3414_v10 = vpop.f32.mrf.mxu1  ;;  %3439 = vmatprep.mubr.msk.f32.mxu1 %vm48_vm1, %v1059_v8  ;;  %vm1046_vm10 = vcmp.ge.f32.partialorder %v1038_v55, 0.0 }
 0x40b   :  { %v1040_v17 = vadd.f32 %v4007_v21, %v1028_v3  ;;  %v1027_v19 = vadd.f32 %v1004_v51, %v885_v4  ;;  %v888_v24 = vadd.f32 %v3414_v10, %v751_v6  ;;  %3440 = vmatmul.mubr.msk.f32.vlgmr.msra.gmra.mxu1 %vm48_vm1, %v1060_v13  ;;  %v1062_v26 = vsel %vm1046_vm10, %v1038_v55, %v1054_v16  ;;  %v399_v55 = vld [vmem:[%s4685_s7 + $0xe8] sm:$0xff] }
 0x40c   :  { %v872_v25 = vpop.f32.mrf.mxu1  ;;  %vm1045_vm11 = vcmp.ge.f32.partialorder %v1037_v9, 0.0  ;;  %v1053_v27 = vmul.f32 0.01, %v1037_v9  ;;  %v3185_v51 = vld [vmem:[%s4685_s7 + $0xa8] ss:$0 sm:$0xff] }
 0x40d   :  { %v1039_v28 = vadd.f32 %v4007_v21, %v1027_v19  ;;  %v1030_v30 = vadd.f32 %v3430_v61, %v888_v24  ;;  %v887_v32 = vadd.f32 %v872_v25, %v750_v14  ;;  %v1056_v35 = vmul.f32 0.01, %v1040_v17 }
 0x40e   :  { %v1061_v34 = vsel %vm1045_vm11, %v1037_v9, %v1053_v27  ;;  %vm1048_vm13 = vcmp.ge.f32.partialorder %v1040_v17, 0.0  ;;  %v397_v27 = vld [vmem:[%s4685_s7 + $0xd8] sm:$0xff] }
 0x40f   :  { %v1042_v62 = vadd.f32 %v4007_v21, %v1030_v30  ;;  %v1029_v36 = vadd.f32 %v1014_v33, %v887_v32  ;;  %3442 = vmatprep.mubr.msk.f32.mxu1 %vm48_vm1, %v1061_v34  ;;  %vm1047_vm12 = vcmp.ge.f32.partialorder %v1039_v28, 0.0  ;;  %v1055_v37 = vmul.f32 0.01, %v1039_v28 }
 0x410   :  { %3443 = vmatmul.mubr.msk.f32.gmra.mxu1 %vm48_vm1, %v1062_v26  ;;  %v1064_v40 = vsel %vm1048_vm13, %v1040_v17, %v1056_v35 }
 0x411   :  { %v1041_v38 = vadd.f32 %v4007_v21, %v1029_v36  ;;  %v1063_v39 = vsel %vm1047_vm12, %v1039_v28, %v1055_v37  ;;  %v1058_v42 = vmul.f32 0.01, %v1042_v62  ;;  %vm1050_vm15 = vcmp.ge.f32.partialorder %v1042_v62, 0.0  ;;  %v408_v21 = vld [vmem:[%s4685_s7 + $0x130] sm:$0xff] }
 0x412   :  { %3445 = vmatprep.mubr.msk.f32.mxu1 %vm48_vm1, %v1063_v39  ;;  %3452 = vmatpush3.msra.mxu0 %v408_v21  ;;  %v396_v28 = vld [vmem:[%s4685_s7 + $0xd0] sm:$0xff] }
 0x413   :  { %vm1049_vm14 = vcmp.ge.f32.partialorder %v1041_v38, 0.0  ;;  %v1057_v41 = vmul.f32 0.01, %v1041_v38  ;;  %v1066_v44 = vsel %vm1050_vm15, %v1042_v62, %v1058_v42  ;;  %3453 = vmatprep.subr.mxu0 %v4689_v2 }
 0x414   :  { %3446 = vmatmul.mubr.msk.f32.gmra.mxu1 %vm48_vm1, %v1064_v40  ;;  %3454 = vmatpush3.msra.mxu0 %v407_v45  ;;  %v1646_v45 = vcombine.high %v3738_v0, %v3738_v0 }
 0x415   :  { %v1065_v43 = vsel %vm1049_vm14, %v1041_v38, %v1057_v41  ;;  %3455 = vmatprep.subr.mxu0 %v4689_v2  ;;  %v395_v38 = vld [vmem:[%s4685_s7 + $0xc8] sm:$0xff] }
 0x416   :  { %3448 = vmatprep.mubr.msk.f32.mxu1 %vm48_vm1, %v1065_v43  ;;  %3456 = vmatpush3.msra.mxu0 %v406_v46 }
 0x417   :  { %3457 = vmatprep.subr.mxu0 %v4689_v2 }
 0x418   :  { %3449 = vmatmul.mubr.msk.f32.gmra.mxu1 %vm48_vm1, %v1066_v44  ;;  %3458 = vmatpush3.msra.mxu0 %v405_v5  ;;  %v1653_v44 = vrot.slane %v3738_v0, %v3799_v18 }
 0x419   :  { %3490 = vmatprep.mubr.msk.f32.mxu1 %vm3669_vm0, %v4689_v2  ;;  %3459 = vmatprep.subr.mxu0 %v4689_v2 }
 0x41a   :  { %3460 = vmatpush3.msra.mxu0 %v404_v47  ;;  %v1661_v21 = vcombine.high %v1653_v44, %v1653_v44  ;;  %v1669_v46 = vrot.slane %v1653_v44, %v3799_v18  ;;  %v1660_v47 = vrot.slane %v1646_v45, %v3799_v18 }
 0x41b   :  { %3461 = vmatprep.subr.mxu0 %v4689_v2 }
 0x41c   :  { %3462 = vmatpush3.msra.mxu0 %v403_v48  ;;  %v1683_v5 = vrot.slane %v1661_v21, %v3799_v18  ;;  %v1698_v48 = vrot.slane %v1669_v46, %v3803_v20 }
 0x41d   :  { %3463 = vmatprep.subr.mxu0 %v4689_v2 }
 0x41e   :  { %3464 = vmatpush3.msra.mxu0 %v402_v50  ;;  %v1693_v50 = vcombine.high %v1683_v5, %v1683_v5 }
 0x41f   :  { %3465 = vmatprep.subr.mxu0 %v4689_v2 }
 0x420   :  { %3466 = vmatpush3.msra.mxu0 %v401_v52  ;;  %v1662_v52 = vcombine.high %v1660_v47, %v1660_v47 }
 0x421   :  { %3467 = vmatprep.subr.mxu0 %v4689_v2 }
 0x422   :  { %3468 = vmatpush3.msra.mxu0 %v400_v54  ;;  %v4136_v54 = vsub.f32 %v1698_v48, %v3738_v0 }
 0x423   :  { %3469 = vmatprep.subr.mxu0 %v4689_v2 }
 0x424   :  { %3470 = vmatpush3.msra.mxu0 %v399_v55  ;;  %v1690_v55 = vrot.slane %v1662_v52, %v3799_v18  ;;  %v1434_v52 = vpop.permute.xlu0 %1433 }
 0x425   :  { %3471 = vmatprep.subr.mxu0 %v4689_v2 }
 0x426   :  { %3472 = vmatpush3.msra.mxu0 %v398_v56  ;;  %v1743_v56 = vmul.f32 %v4136_v54, %v4136_v54 }
 0x427   :  { %3473 = vmatprep.subr.mxu0 %v4689_v2 }
 0x428   :  { %3474 = vmatpush3.msra.mxu0 %v397_v27  ;;  %v3186_v27 = vld [vmem:[%s4685_s7 + $0xb0] ss:$0 sm:$0xff] }
 0x429   :  { %3475 = vmatprep.subr.mxu0 %v4689_v2 }
 0x42a   :  { %3476 = vmatpush3.msra.mxu0 %v396_v28  ;;  %v1702_v28 = vrot.slane %v1683_v5, %v3803_v20 }
 0x42b   :  { %3477 = vmatprep.subr.mxu0 %v4689_v2 }
 0x42c   :  { %3478 = vmatpush3.msra.mxu0 %v395_v38 }
 0x4cb   :  { %v4079_v57 = vpop.f32.mrf.mxu1 }
 0x4cc   :  { %v1201_v1 = vadd.f32 %v4079_v57, %v3185_v51 }
 0x4cd   :  { %v4084_v58 = vpop.f32.mrf.mxu1 }
 0x4ce   :  { %v1200_v60 = vadd.f32 %v3185_v51, %v4084_v58  ;;  %v1333_v8 = vsel %vm48_vm1, %v1201_v1, 0.0  ;;  %v1694_v1 = vcombine.high %v1690_v55, %v1690_v55 }
 0x4d0   :  { %v4088_v3 = vpop.f32.mrf.mxu1  ;;  %v1332_v4 = vsel %vm48_vm1, %v1200_v60, 0.0  ;;  %v1718_v60 = vrot.slane %v1690_v55, %v3803_v20 }
 0x4d1   :  { %v1203_v61 = vadd.f32 %v4088_v3, %v3185_v51  ;;  %v1334_v10 = vadd.f32 %v1333_v8, %v1332_v4  ;;  %v1751_v4 = vsel %vm520_vm2, %v1743_v56, 0.0 }
 0x4d2   :  { %v4091_v6 = vpop.f32.mrf.mxu1 }
 0x4d3   :  { %v1202_v9 = vadd.f32 %v3185_v51, %v4091_v6  ;;  %v1337_v19 = vsel %vm48_vm1, %v1203_v61, 0.0  ;;  %v4150_v61 = vsub.f32 %v1718_v60, %v3738_v0  ;;  %v411_v60 = vld [vmem:[%s4685_s7 + $0x148] sm:$0xff] }
 0x4d4   :  { %v4096_v13 = vpop.f32.mrf.mxu1 }
 0x4d5   :  { %v1335_v14 = vsel %vm48_vm1, %v1202_v9, 0.0  ;;  %v1205_v24 = vadd.f32 %v4096_v13, %v3185_v51  ;;  %4697 = vst [vmem:[#allocation6_spill] sm:$0xff] %v4150_v61  ;;  %v1726_v9 = vrot.slane %v1694_v1, %v3803_v20  ;;  %v410_v1 = vld [vmem:[%s4685_s7 + $0x140] sm:$0xff] }
 0x4d6   :  { %v1336_v16 = vadd.f32 %v1335_v14, %v1334_v10  ;;  %v4099_v17 = vpop.f32.mrf.mxu1  ;;  %v1748_v14 = vmul.f32 %v4150_v61, %v4150_v61 }
 0x4d7   :  { %v1204_v25 = vadd.f32 %v3185_v51, %v4099_v17  ;;  %v1341_v35 = vsel %vm48_vm1, %v1205_v24, 0.0 }
 0x4d8   :  { %v1338_v30 = vadd.f32 %v1337_v19, %v1336_v16  ;;  %v4110_v32 = vpop.f32.mrf.mxu1  ;;  %v4157_v16 = vsub.f32 %v1726_v9, %v3738_v0  ;;  %v1766_v19 = vsel %vm520_vm2, %v1748_v14, 0.0  ;;  %v1608_v9 = vld [vmem:[%s4681_s3 + $0x10] sm:$0xff]  ;;  %v1610_v14 = vld [vmem:[%s4681_s3 + $0x20] sm:$0xff] }
 0x4d9   :  { %v1339_v33 = vsel %vm48_vm1, %v1204_v25, 0.0  ;;  %v1207_v62 = vadd.f32 %v4110_v32, %v3185_v51 }
 0x4da   :  { %v1340_v34 = vadd.f32 %v1339_v33, %v1338_v30  ;;  %v4114_v26 = vpop.f32.mrf.mxu1  ;;  %4698 = vst [vmem:[#allocation7_spill] sm:$0xff] %v4157_v16  ;;  %v1750_v24 = vmul.f32 %v4157_v16, %v4157_v16  ;;  %v1691_v30 = vcombine.high %v1669_v46, %v1669_v46  ;;  %v1676_v33 = vrot.slane %v1660_v47, %v3799_v18 }
 0x4db   :  { %v1206_v36 = vadd.f32 %v3185_v51, %v4114_v26  ;;  %v1345_v41 = vsel %vm48_vm1, %v1207_v62, 0.0  ;;  %v4176_v62 = vsub.f32 %v1702_v28, %v3738_v0 }
 0x4dc   :  { %v1342_v37 = vadd.f32 %v1341_v35, %v1340_v34  ;;  %v1772_v25 = vsel %vm520_vm2, %v1750_v24, 0.0  ;;  %v413_v34 = vld [vmem:[%s4685_s7 + $0x158] sm:$0xff]  ;;  %v412_v35 = vld [vmem:[%s4685_s7 + $0x150] sm:$0xff]  ;;  %v1692_v38 = vcombine.high %v1676_v33, %v1676_v33 }
 0x4dd   :  { %v1343_v39 = vsel %vm48_vm1, %v1206_v36, 0.0  ;;  %3483 = vmatpush3.msra.mxu1 %v413_v34  ;;  %v1706_v36 = vrot.slane %v1691_v30, %v3803_v20  ;;  %v1612_v24 = vld [vmem:[%s4681_s3 + $0x30] sm:$0xff] }
 0x4de   :  { %v1344_v40 = vadd.f32 %v1343_v39, %v1342_v37  ;;  %v1714_v37 = vrot.slane %v1676_v33, %v3803_v20  ;;  %3484 = vmatprep.subr.mxu1 %v4689_v2  ;;  %v1744_v39 = vmul.f32 %v4176_v62, %v4176_v62 }
 0x4df   :  { %3485 = vmatpush3.msra.mxu1 %v412_v35 }
 0x4e0   :  { %v1346_v42 = vadd.f32 %v1345_v41, %v1344_v40  ;;  %v4184_v40 = vsub.f32 %v1706_v36, %v3738_v0  ;;  %v4187_v41 = vsub.f32 %v1714_v37, %v3738_v0  ;;  %3486 = vmatprep.subr.mxu1 %v4689_v2 }
 0x4e1   :  { %3487 = vmatpush3.msra.mxu1 %v411_v60 }
 0x4e2   :  { %v1347_v43 = vmul.f32 0.125, %v1346_v42  ;;  %4699 = vst [vmem:[#allocation8_spill] sm:$0xff] %v4187_v41  ;;  %v1722_v42 = vrot.slane %v1692_v38, %v3803_v20  ;;  %v1745_v44 = vmul.f32 %v4184_v40, %v4184_v40  ;;  %v1747_v45 = vmul.f32 %v4187_v41, %v4187_v41  ;;  %3488 = vmatprep.subr.mxu1 %v4689_v2 }
 0x4e3   :  { %3489 = vmatpush3.msra.mxu1 %v410_v1 }
 0x4e4   :  { %1426 = vrot.lane.b32.xlu1 %v1347_v43, %s3673_s11  ;;  %v1754_v43 = vsel %vm520_vm2, %v1744_v39, 0.0  ;;  %v1757_v21 = vsel %vm520_vm2, %v1745_v44, 0.0  ;;  %v4198_v46 = vsub.f32 %v1722_v42, %v3738_v0  ;;  %v1763_v5 = vsel %vm520_vm2, %v1747_v45, 0.0  ;;  %3493 = vmatprep.subr.mxu1 %v4689_v2 }
 0x4e5   :  { %1755 = vadd.xlane.f32.xlu0 %v1754_v43 }
 0x4e6   :  { %4700 = vst [vmem:[#allocation9_spill] sm:$0xff] %v4198_v46  ;;  %v1749_v47 = vmul.f32 %v4198_v46, %v4198_v46 }
 0x4e8   :  { %1430 = vrot.lane.b32.xlu1 %v3998_v63, %s3674_s12  ;;  %v1710_v63 = vrot.slane %v1693_v50, %v3803_v20  ;;  %v1769_v48 = vsel %vm520_vm2, %v1749_v47, 0.0 }
 0x4e9   :  { %1758 = vadd.xlane.f32.xlu0 %v1757_v21 }
 0x4ea   :  { %v4143_v51 = vsub.f32 %v1710_v63, %v3738_v0 }
 0x4ec   :  { %v1746_v8 = vmul.f32 %v4143_v51, %v4143_v51 }
 0x4ed   :  { %1764 = vadd.xlane.f32.xlu0 %v1763_v5 }
 0x4ee   :  { %v1760_v10 = vsel %vm520_vm2, %v1746_v8, 0.0  ;;  %v1607_v8 = vld [vmem:[%s4681_s3 + $0x8] sm:$0xff] }
 0x4f1   :  { %1770 = vadd.xlane.f32.xlu0 %v1769_v48 }
 0x50c   :  { %1752 = vadd.xlane.f32.xlu1 %v1751_v4  ;;  %v1606_v4 = vld [vmem:[%s4681_s3] sm:$0xff] }
 0x510   :  { %1761 = vadd.xlane.f32.xlu1 %v1760_v10  ;;  %v1609_v10 = vld [vmem:[%s4681_s3 + $0x18] sm:$0xff] }
 0x514   :  { %1767 = vadd.xlane.f32.xlu1 %v1766_v19  ;;  %v1611_v19 = vld [vmem:[%s4681_s3 + $0x28] sm:$0xff] }
 0x518   :  { %1773 = vadd.xlane.f32.xlu1 %v1772_v25  ;;  %v1613_v25 = vld [vmem:[%s4681_s3 + $0x38] sm:$0xff] }
 0x529   :  { %1213 = vrot.lane.b32.xlu1 %v3186_v27, %s3673_s11 }
 0x556   :  { %v1427_v50 = vpop.permute.xlu1 %1426 }
 0x557   :  { %v1436_v63 = vsel %vm48_vm1, %v3793_v12, %v1427_v50  ;;  %v1618_v12 = vld [vmem:[%s4685_s7 + $0x188] sm:$0xff] }
 0x558   :  { %3504 = vmatprep.subr.mxu0 %v1618_v12 }
 0x55a   :  { %v1431_v55 = vpop.permute.xlu1 %1430 }
 0x55b   :  { %v1438_v0 = vsel %vm1437_vm3, %v1436_v63, %v1431_v55 }
 0x55c   :  { %v1440_v56 = vsel %vm1439_vm4, %v1438_v0, %v1434_v52  ;;  %v3189_v52 = vld [vmem:[%s4685_s7 + $0x138] ss:$0 sm:$0xff] }
 0x55d   :  { %3480 = vmatmul.mubr.msk.f32.vlgmr.msra.gmra.mxu0 %vm1445_vm8, %v1440_v56 }
 0x55e   :  { %3506 = vmatprep.mubr.msk.f32.mxu0 %vm282_vm5, %v1606_v4  ;;  %3505 = vmatpush3.msra.mxu0 %v1618_v12 }
 0x561   :  { %3507 = vmatmul.mubr.msk.f32.vlgmr.msra.gmra.mxu0 %vm282_vm5, %v1607_v8 }
 0x562   :  { %3509 = vmatprep.mubr.msk.f32.mxu0 %vm282_vm5, %v1608_v9 }
 0x565   :  { %3510 = vmatmul.mubr.msk.f32.gmra.mxu0 %vm282_vm5, %v1609_v10 }
 0x566   :  { %3512 = vmatprep.mubr.msk.f32.mxu0 %vm282_vm5, %v1610_v14 }
 0x569   :  { %3513 = vmatmul.mubr.msk.f32.gmra.mxu0 %vm282_vm5, %v1611_v19 }
 0x56a   :  { %3515 = vmatprep.mubr.msk.f32.mxu0 %vm282_vm5, %v1612_v24  ;;  %v1617_v24 = vld [vmem:[%s4685_s7 + $0x180] sm:$0xff] }
 0x56d   :  { %3516 = vmatmul.mubr.msk.f32.gmra.mxu0 %vm282_vm5, %v1613_v25 }
 0x56e   :  { %v1756_v27 = vpop.xlane.xlu0 %1755 }
 0x56f   :  { %v1776_v35 = vsub.f32 0.0, %v1756_v27 }
 0x571   :  { %v1784_v39 = vmul.f32 %v3905_v31, %v1776_v35  ;;  %v1614_v35 = vld [vmem:[%s4685_s7 + $0x168] sm:$0xff] }
 0x572   :  { %v1759_v30 = vpop.xlane.xlu0 %1758 }
 0x573   :  { %v1777_v36 = vsub.f32 0.0, %v1759_v30  ;;  %v1793_v47 = vmul.f32 1.442695, %v1784_v39  ;;  %v1616_v30 = vld [vmem:[%s4685_s7 + $0x178] sm:$0xff] }
 0x575   :  { %v1785_v43 = vmul.f32 %v3905_v31, %v1777_v36  ;;  %v1620_v36 = vld [vmem:[%s4685_s7 + $0x198] sm:$0x7f] }
 0x576   :  { %v1765_v37 = vpop.xlane.xlu0 %1764 }
 0x577   :  { %v1779_v45 = vsub.f32 0.0, %v1765_v37  ;;  %v1795_v63 = vmul.f32 1.442695, %v1785_v43 }
 0x579   :  { %v1787_v55 = vmul.f32 %v3905_v31, %v1779_v45 }
 0x57a   :  { %v1771_v5 = vpop.xlane.xlu0 %1770 }
 0x57b   :  { %v1781_v0 = vsub.f32 0.0, %v1771_v5  ;;  %v1799_v14 = vmul.f32 1.442695, %v1787_v55  ;;  %v1624_v55 = vld [vmem:[%s4685_s7 + $0x1b8] sm:$0xff] }
 0x57d   :  { %v1789_v19 = vmul.f32 %v3905_v31, %v1781_v0  ;;  %v1623_v0 = vld [vmem:[%s4685_s7 + $0x1b0] sm:$0xff] }
 0x595   :  { %v1753_v28 = vpop.xlane.xlu1 %1752 }
 0x596   :  { %v1775_v33 = vsub.f32 0.0, %v1753_v28 }
 0x598   :  { %v1783_v38 = vmul.f32 %v3905_v31, %v1775_v33  ;;  %v1803_v33 = vmul.f32 1.442695, %v1789_v19 }
 0x599   :  { %v1762_v34 = vpop.xlane.xlu1 %1761 }
 0x59a   :  { %v1778_v42 = vsub.f32 0.0, %v1762_v34  ;;  %v1791_v44 = vmul.f32 1.442695, %v1783_v38  ;;  %v1615_v34 = vld [vmem:[%s4685_s7 + $0x170] sm:$0xff] }
 0x59b   :  { %v1619_v38 = vld [vmem:[%s4685_s7 + $0x190] sm:$0xff] }
 0x59c   :  { %v1786_v48 = vmul.f32 %v3905_v31, %v1778_v42  ;;  %3639 = vpow2.f32 %v1791_v44 }
 0x59d   :  { %v1768_v21 = vpop.xlane.xlu1 %1767  ;;  %3641 = vpow2.f32 %v1793_v47  ;;  %v3221_v47 = vld [vmem:[%s4685_s7 + $0x1d0] ss:$0 sm:$0xff] }
 0x59e   :  { %v1780_v50 = vsub.f32 0.0, %v1768_v21  ;;  %v1797_v12 = vmul.f32 1.442695, %v1786_v48  ;;  %3643 = vpow2.f32 %v1795_v63  ;;  %v1625_v48 = vld [vmem:[%s4685_s7 + $0x1c0] sm:$0xff]  ;;  %2437 = vrot.lane.b32.xlu1 %v3221_v47, %s3673_s11 }
 0x59f   :  { %3534 = vmatprep.subr.mxu0 %v1625_v48 }
 0x5a0   :  { %v1788_v4 = vmul.f32 %v3905_v31, %v1780_v50  ;;  %3645 = vpow2.f32 %v1797_v12  ;;  %3535 = vmatpush3.msra.mxu0 %v1625_v48  ;;  %v3222_v50 = vld [vmem:[%s4685_s7 + $0x1d8] ss:$0 sm:$0xff] }
 0x5a1   :  { %v1774_v60 = vpop.xlane.xlu1 %1773  ;;  %3647 = vpow2.f32 %v1799_v14  ;;  %3536 = vmatprep.subr.mxu0 %v1624_v55  ;;  %v3187_v12 = vld [vmem:[%s4685_s7 + $0xb8] ss:$0 sm:$0xff] }
 0x5a2   :  { %v1782_v8 = vsub.f32 0.0, %v1774_v60  ;;  %v1801_v27 = vmul.f32 1.442695, %v1788_v4  ;;  %2477 = vrot.lane.b32.xlu1 %v3222_v50, %s3673_s11  ;;  %3537 = vmatpush3.msra.mxu0 %v1624_v55 }
 0x5a3   :  { %3538 = vmatprep.subr.mxu0 %v1623_v0 }
 0x5a4   :  { %v1790_v28 = vmul.f32 %v3905_v31, %v1782_v8  ;;  %3649 = vpow2.f32 %v1801_v27  ;;  %3539 = vmatpush3.msra.mxu0 %v1623_v0 }
 0x5a5   :  { %3651 = vpow2.f32 %v1803_v33 }
 0x5a6   :  { %v1805_v31 = vmul.f32 1.442695, %v1790_v28 }
 0x5a8   :  { %3653 = vpow2.f32 %v1805_v31 }
 0x5a9   :  { %v3640_v37 = vpop.eup %3639 }
 0x5aa   :  { %v3642_v39 = vpop.eup %3641 }
 0x5ab   :  { %v3644_v42 = vpop.eup %3643 }
 0x5ad   :  { %v3646_v43 = vpop.eup %3645 }
 0x5ae   :  { %v3648_v44 = vpop.eup %3647 }
 0x5b1   :  { %v3650_v21 = vpop.eup %3649 }
 0x5b2   :  { %v3652_v45 = vpop.eup %3651 }
 0x5b5   :  { %v3654_v5 = vpop.eup %3653 }
 0x61d   :  { %v1515_v56 = vpop.f32.mrf.mxu0 }
 0x61e   :  { %v1516_v1 = vadd.f32 %v3189_v52, %v1515_v56  ;;  %v1622_v56 = vld [vmem:[%s4685_s7 + $0x1a8] sm:$0xff] }
 0x61f   :  { %v3481_v9 = vpop.f32.mrf.mxu0  ;;  %3540 = vmatprep.subr.mxu0 %v1622_v56 }
 0x620   :  { %vm1519_vm9 = vcmp.ge.f32.partialorder %v1516_v1, 0.0  ;;  %v1520_v10 = vmul.f32 0.01, %v1516_v1  ;;  %3541 = vmatpush3.msra.mxu0 %v1622_v56 }
 0x621   :  { %3577 = vmatprep.subr.mxu0 %v4689_v2  ;;  %v4328_v4 = vpop.f32.mrf.mxu0 }
 0x622   :  { %v1521_v25 = vsel %vm1519_vm9, %v1516_v1, %v1520_v10 }
 0x623   :  { %3491 = vmatmul.mubr.msk.f32.vlgmr.msra.gmra.mxu1 %vm48_vm1, %v1521_v25  ;;  %v4330_v8 = vpop.f32.mrf.mxu0 }
 0x624   :  { %3494 = vmatpush3.msra.mxu1 %v1617_v24  ;;  %3501 = vmatprep.mubr.msk.f32.mxu1 %vm3669_vm0, %v4689_v2 }
 0x625   :  { %3495 = vmatprep.subr.mxu1 %v4689_v2  ;;  %v4334_v10 = vpop.f32.mrf.mxu0 }
 0x626   :  { %3496 = vmatpush3.msra.mxu1 %v1616_v30  ;;  %v4342_v30 = vpop.permute.xlu1 %1213 }
 0x627   :  { %3497 = vmatprep.subr.mxu1 %v4689_v2  ;;  %v2078_v25 = vpop.f32.mrf.mxu0  ;;  %v4364_v55 = vadd.f32 %v4342_v30, %v4099_v17 }
 0x628   :  { %3498 = vmatpush3.msra.mxu1 %v1615_v34 }
 0x629   :  { %3499 = vmatprep.subr.mxu1 %v4689_v2  ;;  %v4344_v34 = vpop.f32.mrf.mxu0  ;;  %vm1228_vm12 = vcmp.ge.f32.partialorder %v4364_v55, 0.0 }
 0x62a   :  { %3500 = vmatpush3.msra.mxu1 %v1614_v35 }
 0x62b   :  { %3502 = vmatmul.mubr.msk.f32.vlgmr.msra.gmra.mxu1 %vm48_vm1, %v3787_v11  ;;  %3518 = vmatprep.subr.msk.mxu1 %vm914_vm6, %v1620_v36 }
 0x62c   :  { %3519 = vmatpush3.msk.msra.mxu1 %vm914_vm6, %v1620_v36  ;;  %3522 = vmatprep.mubr.msk.f32.mxu1 %vm889_vm7, %v3640_v37  ;;  %v1217_v36 = vadd.f32 %v4079_v57, %v4342_v30  ;;  %v1218_v57 = vadd.f32 %v4342_v30, %v4091_v6 }
 0x62d   :  { %3520 = vmatprep.subr.mxu1 %v1619_v38 }
 0x62e   :  { %3521 = vmatpush3.msra.mxu1 %v1619_v38  ;;  %vm1225_vm6 = vcmp.ge.f32.partialorder %v1217_v36, 0.0  ;;  %vm1226_vm11 = vcmp.ge.f32.partialorder %v1218_v57, 0.0 }
 0x62f   :  { %3523 = vmatmul.mubr.msk.f32.vlgmr.msra.gmra.mxu1 %vm889_vm7, %v3642_v39  ;;  %3554 = vmatprep.subr.mxu1 %v4689_v2 }
 0x630   :  { %3525 = vmatprep.mubr.msk.f32.mxu1 %vm889_vm7, %v3644_v42  ;;  %v2088_v42 = vpop.f32.mrf.mxu0 }
 0x633   :  { %3526 = vmatmul.mubr.msk.f32.gmra.mxu1 %vm889_vm7, %v3646_v43 }
 0x634   :  { %3528 = vmatprep.mubr.msk.f32.mxu1 %vm889_vm7, %v3648_v44 }
 0x637   :  { %3529 = vmatmul.mubr.msk.f32.gmra.mxu1 %vm889_vm7, %v3650_v21  ;;  %v1216_v21 = vadd.f32 %v4342_v30, %v4084_v58  ;;  %v4368_v58 = vadd.f32 %v4096_v13, %v4342_v30 }
 0x638   :  { %3531 = vmatprep.mubr.msk.f32.mxu1 %vm889_vm7, %v3652_v45  ;;  %v1233_v45 = vmul.f32 0.01, %v1217_v36 }
 0x639   :  { %v1232_v56 = vmul.f32 0.01, %v1216_v21  ;;  %vm1229_vm13 = vcmp.ge.f32.partialorder %v4368_v58, 0.0 }
 0x63b   :  { %3532 = vmatmul.mubr.msk.f32.gmra.mxu1 %vm889_vm7, %v3654_v5  ;;  %v1219_v5 = vadd.f32 %v4088_v3, %v4342_v30  ;;  %vm1224_vm7 = vcmp.ge.f32.partialorder %v1216_v21, 0.0  ;;  %v1241_v3 = vsel %vm1225_vm6, %v1217_v36, %v1233_v45 }
 0x63c   :  { %3574 = vmatprep.mubr.msk.f32.mxu1 %vm3669_vm0, %v4689_v2 }
 0x63d   :  { %vm1227_vm10 = vcmp.ge.f32.partialorder %v1219_v5, 0.0 }
 0x6e3   :  { %v4311_v52 = vpop.f32.mrf.mxu1 }
 0x6e4   :  { %4701 = vst [vmem:[#allocation10_spill] sm:$0xff] %v4311_v52 }
 0x6e5   :  { %v3492_v63 = vpop.f32.mrf.mxu1 }
 0x6e6   :  { %v3517_v63 = vpop.f32.mrf.mxu0 }
 0x6eb   :  { %v1873_v60 = vpop.f32.mrf.mxu1 }
 0x6ec   :  { %1967 = vrot.lane.b32.xlu0 %v1873_v60, %s3671_s4  ;;  %v1878_v14 = vcombine.high %v1873_v60, %v1873_v60  ;;  %v1885_v24 = vrot.slane %v1873_v60, %v3799_v18  ;;  %v1235_v60 = vmul.f32 0.01, %v1219_v5 }
 0x6ed   :  { %v3503_v1 = vpop.f32.mrf.mxu1 }
 0x6ee   :  { %v1892_v27 = vrot.slane %v1878_v14, %v3799_v18  ;;  %v1893_v33 = vcombine.high %v1885_v24, %v1885_v24  ;;  %v1901_v38 = vrot.slane %v1885_v24, %v3799_v18 }
 0x6ef   :  { %v4332_v9 = vpop.f32.mrf.mxu1 }
 0x6f0   :  { %1253 = vrot.lane.b32.xlu0 %v3187_v12, %s3673_s11  ;;  %v1894_v31 = vcombine.high %v1892_v27, %v1892_v27  ;;  %v1908_v37 = vrot.slane %v1892_v27, %v3799_v18  ;;  %v1915_v39 = vrot.slane %v1893_v33, %v3799_v18  ;;  %v1923_v48 = vcombine.high %v1901_v38, %v1901_v38  ;;  %v2098_v33 = vpop.f32.mrf.mxu0 }
 0x6f1   :  { %v4336_v19 = vpop.f32.mrf.mxu1  ;;  %v1234_v12 = vmul.f32 0.01, %v1218_v57  ;;  %v1930_v17 = vrot.slane %v1901_v38, %v3803_v20 }
 0x6f2   :  { %v1922_v44 = vrot.slane %v1894_v31, %v3799_v18  ;;  %v1924_v47 = vcombine.high %v1908_v37, %v1908_v37  ;;  %v1925_v50 = vcombine.high %v1915_v39, %v1915_v39  ;;  %v1946_v6 = vrot.slane %v1908_v37, %v3803_v20 }
 0x6f3   :  { %v4340_v28 = vpop.f32.mrf.mxu1  ;;  %v1934_v14 = vrot.slane %v1915_v39, %v3803_v20  ;;  %v1938_v24 = vrot.slane %v1923_v48, %v3803_v20 }
 0x6f4   :  { %v1926_v18 = vcombine.high %v1922_v44, %v1922_v44  ;;  %v1954_v1 = vrot.slane %v1924_v47, %v3803_v20  ;;  %v1942_v27 = vrot.slane %v1925_v50, %v3803_v20  ;;  %v1950_v31 = vrot.slane %v1922_v44, %v3803_v20 }
 0x6f5   :  { %v4346_v35 = vpop.f32.mrf.mxu1 }
 0x6f6   :  { %v1958_v36 = vrot.slane %v1926_v18, %v3803_v20  ;;  %v3211_v18 = vld [vmem:[%s4685_s7 + $0x1a0] ss:$0 sm:$0xff] }
 0x6f7   :  { %v4353_v43 = vpop.f32.mrf.mxu1 }
 0x6f9   :  { %v2228_v0 = vpop.f32.mrf.mxu1 }
 0x6fb   :  { %v3533_v47 = vpop.f32.mrf.mxu1 }
 0x75e   :  { %v1968_v13 = vpop.permute.xlu0 %1967 }
 0x75f   :  { %v1974_v37 = vadd.f32 %v1968_v13, %v1946_v6  ;;  %v1976_v45 = vadd.f32 %v1968_v13, %v1954_v1  ;;  %v1970_v2 = vadd.f32 %v1968_v13, %v1930_v17  ;;  %v1971_v52 = vadd.f32 %v1968_v13, %v1934_v14  ;;  %v2238_v1 = vpop.f32.mrf.mxu1 }
 0x760   :  { %v1972_v38 = vadd.f32 %v1968_v13, %v1938_v24  ;;  %v1973_v11 = vadd.f32 %v1968_v13, %v1942_v27  ;;  %v1975_v39 = vadd.f32 %v1968_v13, %v1950_v31  ;;  %v1977_v46 = vadd.f32 %v1968_v13, %v1958_v36 }
 0x761   :  { %v2111_v48 = vadd.f32 %v2088_v42, %v1974_v37  ;;  %v2113_v16 = vadd.f32 %v2098_v33, %v1976_v45  ;;  %v2107_v61 = vadd.f32 %v4330_v8, %v1970_v2  ;;  %v2108_v41 = vadd.f32 %v4328_v4, %v1971_v52 }
 0x762   :  { %v4379_v50 = vpop.permute.xlu0 %1253  ;;  %v2109_v44 = vadd.f32 %v2078_v25, %v1972_v38  ;;  %v2110_v20 = vadd.f32 %v4334_v10, %v1973_v11  ;;  %v1240_v42 = vsel %vm1224_vm7, %v1216_v21, %v1232_v56  ;;  %v1243_v14 = vsel %vm1227_vm10, %v1219_v5, %v1235_v60 }
 0x763   :  { %v2251_v6 = vadd.f32 %v2228_v0, %v2111_v48  ;;  %v1257_v17 = vmul.f32 %v4379_v50, %v1241_v3  ;;  %v1256_v24 = vmul.f32 %v4379_v50, %v1240_v42  ;;  %v1242_v2 = vsel %vm1226_vm11, %v1218_v57, %v1234_v12 }
 0x764   :  { %v2247_v52 = vadd.f32 %v4336_v19, %v2107_v61  ;;  %v1236_v11 = vmul.f32 0.01, %v4364_v55  ;;  %v2114_v4 = vadd.f32 %v3517_v63, %v1977_v46  ;;  %v2248_v8 = vadd.f32 %v4332_v9, %v2108_v41 }
 0x765   :  { %1274 = vrot.lane.b32.xlu1 %v1257_v17, %s3671_s4  ;;  %v2112_v10 = vadd.f32 %v4344_v34, %v1975_v39  ;;  %v2253_v25 = vadd.f32 %v2238_v1, %v2113_v16  ;;  %1272 = vrot.lane.b32.xlu0 %v1256_v24, %s3671_s4  ;;  %v2249_v5 = vadd.f32 %v4346_v35, %v2109_v44  ;;  %v3220_v1 = vld [vmem:[%s4685_s7 + $0x1c8] ss:$0 sm:$0xff]  ;;  %v4430_v17 = vpop.permute.xlu1 %2437 }
 0x766   :  { %v2259_v21 = vadd.f32 %v3211_v18, %v2247_v52  ;;  %v2250_v57 = vadd.f32 %v4340_v28, %v2110_v20  ;;  %v2263_v61 = vadd.f32 %v3211_v18, %v2251_v6  ;;  %v1259_v19 = vmul.f32 %v4379_v50, %v1243_v14 }
 0x767   :  { %v1258_v46 = vmul.f32 %v4379_v50, %v1242_v2  ;;  %v2260_v63 = vadd.f32 %v3211_v18, %v2248_v8  ;;  %v2261_v9 = vadd.f32 %v3211_v18, %v2249_v5  ;;  %v1244_v34 = vsel %vm1228_vm12, %v4364_v55, %v1236_v11 }
 0x768   :  { %vm2267_vm14 = vcmp.ge.f32.partialorder %v2259_v21, 0.0  ;;  %v2275_v41 = vmul.f32 0.01, %v2259_v21  ;;  %v2262_v0 = vadd.f32 %v3211_v18, %v2250_v57  ;;  %v1237_v28 = vmul.f32 0.01, %v4368_v58 }
 0x769   :  { %1278 = vrot.lane.b32.xlu1 %v1259_v19, %s3671_s4  ;;  %vm2268_vm15 = vcmp.ge.f32.partialorder %v2260_v63, 0.0  ;;  %v2276_v16 = vmul.f32 0.01, %v2260_v63  ;;  %v2254_v35 = vadd.f32 %v3533_v47, %v2114_v4  ;;  %1276 = vrot.lane.b32.xlu0 %v1258_v46, %s3671_s4  ;;  %vm2269_vm4 = vcmp.ge.f32.partialorder %v2261_v9, 0.0  ;;  %v4438_v5 = vpop.permute.xlu1 %2477 }
 0x76a   :  { %v2283_v3 = vsel %vm2267_vm14, %v2259_v21, %v2275_v41  ;;  %v2277_v56 = vmul.f32 0.01, %v2261_v9  ;;  %v2265_v60 = vadd.f32 %v3211_v18, %v2253_v25  ;;  %v2278_v27 = vmul.f32 0.01, %v2262_v0 }
 0x76b   :  { %3542 = vmatprep.mubr.msk.f32.mxu0 %vm48_vm1, %v2283_v3  ;;  %v2284_v12 = vsel %vm2268_vm15, %v2260_v63, %v2276_v16  ;;  %v2252_v13 = vadd.f32 %v4353_v43, %v2112_v10  ;;  %v2279_v33 = vmul.f32 0.01, %v2263_v61  ;;  %v1260_v55 = vmul.f32 %v4379_v50, %v1244_v34 }
 0x76c   :  { %3543 = vmatmul.mubr.msk.f32.vlgmr.msra.gmra.mxu0 %vm48_vm1, %v2284_v12  ;;  %v2285_v31 = vsel %vm2269_vm4, %v2261_v9, %v2277_v56  ;;  %vm2270_vm8 = vcmp.ge.f32.partialorder %v2262_v0, 0.0  ;;  %vm2271_vm9 = vcmp.ge.f32.partialorder %v2263_v61, 0.0  ;;  %v2266_v37 = vadd.f32 %v3211_v18, %v2254_v35 }
 0x76d   :  { %3545 = vmatprep.mubr.msk.f32.mxu0 %vm48_vm1, %v2285_v31  ;;  %v2264_v36 = vadd.f32 %v3211_v18, %v2252_v13  ;;  %1280 = vrot.lane.b32.xlu0 %v1260_v55, %s3671_s4  ;;  %v2286_v45 = vsel %vm2270_vm8, %v2262_v0, %v2278_v27  ;;  %v1245_v47 = vsel %vm1229_vm13, %v4368_v58, %v1237_v28  ;;  %v2281_v38 = vmul.f32 0.01, %v2265_v60 }
 0x76e   :  { %v2287_v39 = vsel %vm2271_vm9, %v2263_v61, %v2279_v33  ;;  %v1261_v48 = vmul.f32 %v4379_v50, %v1245_v47  ;;  %vm2273_vm7 = vcmp.ge.f32.partialorder %v2265_v60, 0.0  ;;  %v2282_v44 = vmul.f32 0.01, %v2266_v37 }
 0x76f   :  { %v2280_v43 = vmul.f32 0.01, %v2264_v36  ;;  %vm2272_vm6 = vcmp.ge.f32.partialorder %v2264_v36, 0.0  ;;  %v2289_v18 = vsel %vm2273_vm7, %v2265_v60, %v2281_v38  ;;  %vm2274_vm10 = vcmp.ge.f32.partialorder %v2266_v37, 0.0 }
 0x770   :  { %3546 = vmatmul.mubr.msk.f32.gmra.mxu0 %vm48_vm1, %v2286_v45  ;;  %v2290_v58 = vsel %vm2274_vm10, %v2266_v37, %v2282_v44  ;;  %v4702_v6 = vmov 0.0   ;;  %v1222_v14 = vadd.f32 %v4342_v30, %v4114_v26  ;;  %v1223_v21 = vadd.f32 %v4110_v32, %v4342_v30 }
 0x771   :  { %3548 = vmatprep.mubr.msk.f32.mxu0 %vm48_vm1, %v2287_v39  ;;  %1282 = vrot.lane.b32.xlu0 %v1261_v48, %s3671_s4  ;;  %v2288_v20 = vsel %vm2272_vm6, %v2264_v36, %v2280_v43  ;;  %vm2662_vm10 = vcmask 654336  }
 0x772   :  { %v1238_v25 = vmul.f32 0.01, %v1222_v14  ;;  %vm1230_vm14 = vcmp.ge.f32.partialorder %v1222_v14, 0.0  ;;  %v1239_v60 = vmul.f32 0.01, %v1223_v21  ;;  %vm1231_vm4 = vcmp.ge.f32.partialorder %v1223_v21, 0.0 }
 0x774   :  { %3549 = vmatmul.mubr.msk.f32.gmra.mxu0 %vm48_vm1, %v2288_v20  ;;  %v1246_v37 = vsel %vm1230_vm14, %v1222_v14, %v1238_v25 }
 0x775   :  { %3551 = vmatprep.mubr.msk.f32.mxu0 %vm48_vm1, %v2289_v18  ;;  %v1262_v38 = vmul.f32 %v4379_v50, %v1246_v37 }
 0x778   :  { %3552 = vmatmul.mubr.msk.f32.gmra.mxu0 %vm48_vm1, %v2290_v58 }
 0x779   :  { %3585 = vmatprep.mubr.msk.f32.mxu0 %vm3669_vm0, %v4702_v6 }
 0x82c   :  { %v3544_v42 = vpop.f32.mrf.mxu0 }
 0x82d   :  { %v2425_v24 = vadd.f32 %v3544_v42, %v3220_v1  ;;  %v2441_v2 = vadd.f32 %v3544_v42, %v4430_v17 }
 0x82e   :  { %v2381_v52 = vpop.f32.mrf.mxu0 }
 0x82f   :  { %vm2449_vm11 = vcmp.ge.f32.partialorder %v2441_v2, 0.0  ;;  %v2457_v11 = vmul.f32 0.01, %v2441_v2  ;;  %v2424_v4 = vadd.f32 %v3220_v1, %v2381_v52  ;;  %v2440_v8 = vadd.f32 %v4430_v17, %v2381_v52 }
 0x830   :  { %v3547_v10 = vpop.f32.mrf.mxu0  ;;  %v2557_v57 = vsel %vm48_vm1, %v2425_v24, 0.0 }
 0x831   :  { %v2556_v26 = vsel %vm48_vm1, %v2424_v4, 0.0  ;;  %v2443_v61 = vadd.f32 %v3547_v10, %v4430_v17  ;;  %v2465_v19 = vsel %vm2449_vm11, %v2441_v2, %v2457_v11  ;;  %vm2448_vm12 = vcmp.ge.f32.partialorder %v2440_v8, 0.0 }
 0x832   :  { %v2456_v46 = vmul.f32 0.01, %v2440_v8  ;;  %v2558_v63 = vadd.f32 %v2557_v57, %v2556_v26  ;;  %v2391_v41 = vpop.f32.mrf.mxu0  ;;  %v2481_v9 = vmul.f32 %v4438_v5, %v2465_v19  ;;  %v2427_v0 = vadd.f32 %v3547_v10, %v3220_v1 }
 0x833   :  { %vm2451_vm13 = vcmp.ge.f32.partialorder %v2443_v61, 0.0  ;;  %v2459_v16 = vmul.f32 0.01, %v2443_v61  ;;  %v2426_v34 = vadd.f32 %v3220_v1, %v2391_v41  ;;  %v2442_v32 = vadd.f32 %v4430_v17, %v2391_v41 }
 0x834   :  { %v3550_v30 = vpop.f32.mrf.mxu0  ;;  %2498 = vrot.lane.b32.xlu1 %v2481_v9, %s3671_s4  ;;  %v2464_v28 = vsel %vm2448_vm12, %v2440_v8, %v2456_v46  ;;  %v2561_v31 = vsel %vm48_vm1, %v2427_v0, 0.0  ;;  %v1247_v2 = vsel %vm1231_vm4, %v1223_v21, %v1239_v60  ;;  %vm2878_vm11 = vcmask 1042432  }
 0x835   :  { %v2559_v35 = vsel %vm48_vm1, %v2426_v34, 0.0  ;;  %v2445_v3 = vadd.f32 %v3550_v30, %v4430_v17  ;;  %v2480_v56 = vmul.f32 %v4438_v5, %v2464_v28  ;;  %vm2450_vm15 = vcmp.ge.f32.partialorder %v2442_v32, 0.0  ;;  %v1273_v34 = vpop.permute.xlu0 %1272 }
 0x836   :  { %v2458_v12 = vmul.f32 0.01, %v2442_v32  ;;  %v2560_v27 = vadd.f32 %v2559_v35, %v2558_v63  ;;  %v2401_v13 = vpop.f32.mrf.mxu0  ;;  %v2467_v33 = vsel %vm2451_vm13, %v2443_v61, %v2459_v16  ;;  %v2429_v55 = vadd.f32 %v3550_v30, %v3220_v1 }
 0x837   :  { %v2428_v36 = vadd.f32 %v3220_v1, %v2401_v13  ;;  %2496 = vrot.lane.b32.xlu0 %v2480_v56, %s3671_s4  ;;  %v2483_v43 = vmul.f32 %v4438_v5, %v2467_v33  ;;  %v2461_v39 = vmul.f32 0.01, %v2445_v3  ;;  %v2444_v48 = vadd.f32 %v4430_v17, %v2401_v13 }
 0x838   :  { %v2562_v45 = vadd.f32 %v2561_v31, %v2560_v27  ;;  %v3553_v47 = vpop.f32.mrf.mxu0  ;;  %v2466_v20 = vsel %vm2450_vm15, %v2442_v32, %v2458_v12  ;;  %vm2453_vm8 = vcmp.ge.f32.partialorder %v2445_v3, 0.0  ;;  %v2565_v42 = vsel %vm48_vm1, %v2429_v55, 0.0  ;;  %v1275_v32 = vpop.permute.xlu1 %1274 }
 0x839   :  { %v2563_v44 = vsel %vm48_vm1, %v2428_v36, 0.0  ;;  %2502 = vrot.lane.b32.xlu1 %v2483_v43, %s3671_s4  ;;  %v2431_v14 = vadd.f32 %v3553_v47, %v3220_v1  ;;  %v2482_v4 = vmul.f32 %v4438_v5, %v2466_v20  ;;  %v1263_v8 = vmul.f32 %v4379_v50, %v1247_v2  ;;  %v1277_v28 = vpop.permute.xlu0 %1276 }
 0x83a   :  { %v2564_v18 = vadd.f32 %v2563_v44, %v2562_v45  ;;  %v2411_v58 = vpop.f32.mrf.mxu0  ;;  %v2460_v10 = vmul.f32 0.01, %v2444_v48  ;;  %v2447_v25 = vadd.f32 %v3553_v47, %v4430_v17  ;;  %v2469_v26 = vsel %vm2453_vm8, %v2445_v3, %v2461_v39 }
 0x83b   :  { %v2430_v24 = vadd.f32 %v3220_v1, %v2411_v58  ;;  %1284 = vrot.lane.b32.xlu0 %v1262_v38, %s3671_s4  ;;  %v2446_v52 = vadd.f32 %v4430_v17, %v2411_v58  ;;  %vm2452_vm9 = vcmp.ge.f32.partialorder %v2444_v48, 0.0  ;;  %v2569_v21 = vsel %vm48_vm1, %v2431_v14, 0.0 }
 0x83c   :  { %v2566_v11 = vadd.f32 %v2565_v42, %v2564_v18  ;;  %v2485_v19 = vmul.f32 %v4438_v5, %v2469_v26  ;;  %v2463_v17 = vmul.f32 0.01, %v2447_v25  ;;  %v2468_v41 = vsel %vm2452_vm9, %v2444_v48, %v2460_v10  ;;  %v1279_v3 = vpop.permute.xlu1 %1278 }
 0x83d   :  { %v2567_v57 = vsel %vm48_vm1, %v2430_v24, 0.0  ;;  %vm2454_vm6 = vcmp.ge.f32.partialorder %v2446_v52, 0.0  ;;  %v2462_v1 = vmul.f32 0.01, %v2446_v52  ;;  %2500 = vrot.lane.b32.xlu1 %v2482_v4, %s3671_s4  ;;  %vm2455_vm7 = vcmp.ge.f32.partialorder %v2447_v25, 0.0  ;;  %v1281_v60 = vpop.permute.xlu0 %1280 }
 0x83e   :  { %v2568_v61 = vadd.f32 %v2567_v57, %v2566_v11  ;;  %v2484_v9 = vmul.f32 %v4438_v5, %v2468_v41  ;;  %v2471_v0 = vsel %vm2455_vm7, %v2447_v25, %v2463_v17  ;;  %v1296_v30 = vsel %vm48_vm1, %v1273_v34, 0.0  ;;  %v3188_v11 = vld [vmem:[%s4685_s7 + $0xc0] ss:$0 sm:$0xff] }
 0x83f   :  { %1286 = vrot.lane.b32.xlu0 %v1263_v8, %s3671_s4  ;;  %v2470_v50 = vsel %vm2454_vm6, %v2446_v52, %v2462_v1  ;;  %v2487_v16 = vmul.f32 %v4438_v5, %v2471_v0  ;;  %v1302_v35 = vsel %vm48_vm1, %v1277_v28, 0.0  ;;  %v1305_v56 = vsel %vm48_vm1, %v1279_v3, 0.0  ;;  %v3223_v41 = vld [vmem:[%s4685_s7 + $0x1e0] ss:$0 sm:$0xff] }
 0x840   :  { %v4470_v46 = vadd.f32 %v2569_v21, %v2568_v61  ;;  %v2486_v63 = vmul.f32 %v4438_v5, %v2470_v50  ;;  %v1299_v12 = vsel %vm48_vm1, %v1275_v32, 0.0  ;;  %v3675_v27 = vmov 0  }
 0x841   :  { %2506 = vrot.lane.b32.xlu1 %v2485_v19, %s3671_s4  ;;  %3616 = vset.pattern.permute.xlu0 %v3675_v27  ;;  %v1308_v5 = vsel %vm48_vm1, %v1281_v60, 0.0  ;;  %v1283_v13 = vpop.permute.xlu0 %1282 }
 0x842   :  { %3615 = vset.pattern.permute.xlu1 %v3675_v27  ;;  %v1311_v33 = vsel %vm48_vm1, %v1283_v13, 0.0 }
 0x843   :  { %2508 = vrot.lane.b32.xlu0 %v2486_v63, %s3671_s4 }
 0x845   :  { %2504 = vrot.lane.b32.xlu1 %v2484_v9, %s3671_s4 }
 0x849   :  { %2510 = vrot.lane.b32.xlu1 %v2487_v16, %s3671_s4 }
 0x862   :  { %1297 = vadd.xlane.f32.xlu0 %v1296_v30 }
 0x866   :  { %1303 = vadd.xlane.f32.xlu0 %v1302_v35 }
 0x86a   :  { %1306 = vadd.xlane.f32.xlu0 %v1305_v56 }
 0x86d   :  { %1300 = vadd.xlane.f32.xlu1 %v1299_v12 }
 0x871   :  { %1309 = vadd.xlane.f32.xlu1 %v1308_v5 }
 0x875   :  { %1312 = vadd.xlane.f32.xlu1 %v1311_v33 }
 0x8a6   :  { %v2499_v31 = vpop.permute.xlu1 %2498 }
 0x8a7   :  { %v2523_v55 = vsel %vm48_vm1, %v2499_v31, 0.0 }
 0x8a8   :  { %2524 = vadd.xlane.f32.xlu0 %v2523_v55 }
 0x8a9   :  { %v2497_v36 = vpop.permute.xlu0 %2496 }
 0x8aa   :  { %v2520_v18 = vsel %vm48_vm1, %v2497_v36, 0.0  ;;  %v1639_v36 = vld [vmem:[%s4685_s7 + $0x230] sm:$0xff] }
 0x8ab   :  { %v2503_v37 = vpop.permute.xlu1 %2502  ;;  %3555 = vmatpush3.msra.mxu1 %v1639_v36 }
 0x8ac   :  { %v2529_v47 = vsel %vm48_vm1, %v2503_v37, 0.0  ;;  %v1638_v37 = vld [vmem:[%s4685_s7 + $0x228] sm:$0xff]  ;;  %3556 = vmatprep.subr.mxu1 %v4702_v6 }
 0x8ad   :  { %v1285_v45 = vpop.permute.xlu0 %1284  ;;  %2530 = vadd.xlane.f32.xlu0 %v2529_v47  ;;  %3557 = vmatpush3.msra.mxu1 %v1638_v37  ;;  %v1636_v47 = vld [vmem:[%s4685_s7 + $0x218] sm:$0xff] }
 0x8ae   :  { %v1314_v43 = vsel %vm48_vm1, %v1285_v45, 0.0  ;;  %v1637_v45 = vld [vmem:[%s4685_s7 + $0x220] sm:$0xff]  ;;  %3558 = vmatprep.subr.mxu1 %v4702_v6 }
 0x8af   :  { %1315 = vadd.xlane.f32.xlu1 %v1314_v43  ;;  %v2501_v38 = vpop.permute.xlu1 %2500  ;;  %3559 = vmatpush3.msra.mxu1 %v1637_v45  ;;  %v4518_v43 = vld [vmem:[%s4679_s1] sm:$0xff] }
 0x8b0   :  { %v2526_v48 = vsel %vm48_vm1, %v2501_v38, 0.0  ;;  %3560 = vmatprep.subr.mxu1 %v4702_v6  ;;  %v1635_v38 = vld [vmem:[%s4685_s7 + $0x210] sm:$0xff] }
 0x8b1   :  { %v1287_v39 = vpop.permute.xlu0 %1286  ;;  %2527 = vadd.xlane.f32.xlu0 %v2526_v48  ;;  %3561 = vmatpush3.msra.mxu1 %v1636_v47  ;;  %v1633_v48 = vld [vmem:[%s4685_s7 + $0x200] sm:$0xff] }
 0x8b2   :  { %v1317_v44 = vsel %vm48_vm1, %v1287_v39, 0.0  ;;  %3562 = vmatprep.subr.mxu1 %v4702_v6  ;;  %v1634_v39 = vld [vmem:[%s4685_s7 + $0x208] sm:$0xff] }
 0x8b3   :  { %1318 = vadd.xlane.f32.xlu1 %v1317_v44  ;;  %v2507_v20 = vpop.permute.xlu1 %2506  ;;  %3563 = vmatpush3.msra.mxu1 %v1635_v38 }
 0x8b4   :  { %v2535_v14 = vsel %vm48_vm1, %v2507_v20, 0.0  ;;  %3564 = vmatprep.subr.mxu1 %v4702_v6 }
 0x8b5   :  { %v2509_v52 = vpop.permute.xlu0 %2508  ;;  %3565 = vmatpush3.msra.mxu1 %v1634_v39  ;;  %v4703_v39 = vld [vmem:[#allocation8_spill] sm:$0xff] }
 0x8b6   :  { %v2538_v57 = vsel %vm48_vm1, %v2509_v52, 0.0  ;;  %3566 = vmatprep.subr.mxu1 %v4702_v6  ;;  %v4551_v52 = vld [vmem:[%s4678_s0] sm:$0xff]  ;;  %s3678_s0 = smov 125  }
 0x8b7   :  { %2521 = vadd.xlane.f32.xlu1 %v2520_v18  ;;  %v2505_v58 = vpop.permute.xlu1 %2504  ;;  %3567 = vmatpush3.msra.mxu1 %v1633_v48 }
 0x8b8   :  { %v2532_v42 = vsel %vm48_vm1, %v2505_v58, 0.0  ;;  %3568 = vmatprep.subr.mxu1 %v4702_v6  ;;  %v1632_v58 = vld [vmem:[%s4685_s7 + $0x1f8] sm:$0xff] }
 0x8b9   :  { %2533 = vadd.xlane.f32.xlu0 %v2532_v42  ;;  %v1631_v42 = vld [vmem:[%s4685_s7 + $0x1f0] sm:$0xff]  ;;  %3569 = vmatpush3.msra.mxu1 %v1632_v58 }
 0x8ba   :  { %3570 = vmatprep.subr.mxu1 %v4702_v6 }
 0x8bb   :  { %v2511_v24 = vpop.permute.xlu1 %2510  ;;  %3571 = vmatpush3.msra.mxu1 %v1631_v42 }
 0x8bc   :  { %v2541_v2 = vsel %vm48_vm1, %v2511_v24, 0.0  ;;  %v1630_v24 = vld [vmem:[%s4685_s7 + $0x1e8] sm:$0xff]  ;;  %3572 = vmatprep.subr.mxu1 %v4702_v6 }
 0x8bd   :  { %2536 = vadd.xlane.f32.xlu0 %v2535_v14  ;;  %3573 = vmatpush3.msra.mxu1 %v1630_v24  ;;  %v4705_v24 = vld [vmem:[#allocation7_spill] sm:$0xff] }
 0x8be   :  { %3588 = vmatprep.subr.mxu1 %v4702_v6 }
 0x8c1   :  { %2542 = vadd.xlane.f32.xlu0 %v2541_v2  ;;  %v2571_v2 = vmul.f32 0.125, %v4470_v46  ;;  %v2637_v46 = vmul.f32 0.75, %v4518_v43 }
 0x8eb   :  { %v1298_v4 = vpop.xlane.xlu0 %1297 }
 0x8ec   :  { %v1324_v8 = vadd.f32 %v3188_v11, %v1298_v4 }
 0x8ee   :  { %1350 = vperm.xlu1 %3615, %v1324_v8  }
 0x8ef   :  { %v1304_v26 = vpop.xlane.xlu0 %1303 }
 0x8f0   :  { %v1326_v1 = vadd.f32 %v3188_v11, %v1304_v26 }
 0x8f3   :  { %v1307_v61 = vpop.xlane.xlu0 %1306 }
 0x8f4   :  { %v1327_v19 = vadd.f32 %v3188_v11, %v1307_v61 }
 0x8f6   :  { %v1301_v10 = vpop.xlane.xlu1 %1300 }
 0x8f7   :  { %v1325_v25 = vadd.f32 %v3188_v11, %v1301_v10 }
 0x8f9   :  { %1355 = vperm.xlu0 %3616, %v1325_v25  }
 0x8fa   :  { %v1310_v21 = vpop.xlane.xlu1 %1309 }
 0x8fb   :  { %v1328_v50 = vadd.f32 %v3188_v11, %v1310_v21 }
 0x8fe   :  { %v1313_v17 = vpop.xlane.xlu1 %1312 }
 0x8ff   :  { %v1329_v63 = vadd.f32 %v3188_v11, %v1313_v17 }
 0x912   :  { %2539 = vadd.xlane.f32.xlu1 %v2538_v57 }
 0x923   :  { %1360 = vperm.xlu1 %3615, %v1326_v1  }
 0x927   :  { %1365 = vperm.xlu1 %3615, %v1327_v19  }
 0x92b   :  { %1370 = vperm.xlu1 %3615, %v1328_v50  }
 0x92f   :  { %1375 = vperm.xlu1 %3615, %v1329_v63  }
 0x931   :  { %v2525_v9 = vpop.xlane.xlu0 %2524 }
 0x932   :  { %v2549_v0 = vadd.f32 %v3223_v41, %v2525_v9 }
 0x934   :  { %2579 = vperm.xlu1 %3615, %v2549_v0  }
 0x936   :  { %v2531_v32 = vpop.xlane.xlu0 %2530 }
 0x937   :  { %v2551_v60 = vadd.f32 %v3223_v41, %v2531_v32 }
 0x938   :  { %v1316_v16 = vpop.xlane.xlu1 %1315 }
 0x939   :  { %v1330_v34 = vadd.f32 %v3188_v11, %v1316_v16 }
 0x93a   :  { %v2528_v56 = vpop.xlane.xlu0 %2527 }
 0x93b   :  { %1380 = vperm.xlu0 %3616, %v1330_v34   ;;  %v2550_v27 = vadd.f32 %v3223_v41, %v2528_v56 }
 0x93c   :  { %v1319_v30 = vpop.xlane.xlu1 %1318 }
 0x93d   :  { %v1331_v28 = vadd.f32 %v3188_v11, %v1319_v30  ;;  %v1413_v11 = vmul.f32 0.75, %v4551_v52 }
 0x93f   :  { %1385 = vperm.xlu0 %3616, %v1331_v28  }
 0x940   :  { %v2522_v35 = vpop.xlane.xlu1 %2521 }
 0x941   :  { %v2548_v3 = vadd.f32 %v3223_v41, %v2522_v35 }
 0x942   :  { %v2534_v12 = vpop.xlane.xlu0 %2533 }
 0x943   :  { %2574 = vperm.xlu1 %3615, %v2548_v3   ;;  %v2552_v13 = vadd.f32 %v3223_v41, %v2534_v12 }
 0x946   :  { %v2537_v5 = vpop.xlane.xlu0 %2536 }
 0x947   :  { %2589 = vperm.xlu1 %3615, %v2551_v60   ;;  %v2553_v33 = vadd.f32 %v3223_v41, %v2537_v5 }
 0x94a   :  { %v2543_v31 = vpop.xlane.xlu0 %2542 }
 0x94b   :  { %2584 = vperm.xlu1 %3615, %v2550_v27   ;;  %v2555_v55 = vadd.f32 %v3223_v41, %v2543_v31 }
 0x94f   :  { %2594 = vperm.xlu1 %3615, %v2552_v13  }
 0x953   :  { %2599 = vperm.xlu1 %3615, %v2553_v33  }
 0x957   :  { %2609 = vperm.xlu1 %3615, %v2555_v55  }
 0x95b   :  { %2653 = vrot.lane.b32.xlu1 %v4518_v43, %s3676_s26 }
 0x969   :  { %v1351_v44 = vpop.permute.xlu1 %1350 }
 0x96a   :  { %v1388_v57 = vmul.f32 %v1351_v44, %v3808_v23  ;;  %v4704_v44 = vld [vmem:[#allocation6_spill] sm:$0xff] }
 0x96c   :  { %v1396_v19 = vsel %vm520_vm2, %v1388_v57, 0.0 }
 0x974   :  { %v1356_v8 = vpop.permute.xlu0 %1355 }
 0x975   :  { %v1389_v25 = vmul.f32 %v1356_v8, %v3847_v49 }
 0x977   :  { %v1397_v1 = vsel %vm520_vm2, %v1389_v25, 0.0 }
 0x978   :  { %v1398_v63 = vadd.f32 %v1397_v1, %v1396_v19 }
 0x99b   :  { %v2540_v20 = vpop.xlane.xlu1 %2539 }
 0x99c   :  { %v2554_v18 = vadd.f32 %v3223_v41, %v2540_v20 }
 0x99e   :  { %2604 = vperm.xlu0 %3616, %v2554_v18  }
 0x99f   :  { %v1361_v14 = vpop.permute.xlu1 %1360 }
 0x9a0   :  { %v1390_v26 = vmul.f32 %v1361_v14, %v3854_v53 }
 0x9a2   :  { %2650 = vrot.lane.b32.xlu0 %v2571_v2, %s3673_s11  ;;  %v1399_v50 = vsel %vm520_vm2, %v1390_v26, 0.0  ;;  %v4707_v26 = vld [vmem:[#allocation5_spill] sm:$0xff] }
 0x9a3   :  { %v1366_v4 = vpop.permute.xlu1 %1365  ;;  %v1400_v9 = vadd.f32 %v1399_v50, %v1398_v63  ;;  %v1412_v50 = vmul.f32 0.25, %v4551_v52 }
 0x9a4   :  { %v1391_v61 = vmul.f32 %v1366_v4, %v3865_v59 }
 0x9a6   :  { %1415 = vrot.lane.b32.xlu0 %v1413_v11, %s3677_s20  ;;  %v1401_v41 = vsel %vm520_vm2, %v1391_v61, 0.0  ;;  %v4706_v11 = vld [vmem:[#allocation9_spill] sm:$0xff] }
 0x9a7   :  { %v1371_v10 = vpop.permute.xlu1 %1370  ;;  %v1402_v53 = vadd.f32 %v1401_v41, %v1400_v9  ;;  %v1644_v9 = vld [vmem:[%s4685_s7 + $0x258] sm:$0xff] }
 0x9a8   :  { %v1392_v17 = vmul.f32 %v1371_v10, %v3878_v7  ;;  %3578 = vmatpush3.msra.mxu0 %v1644_v9 }
 0x9a9   :  { %3579 = vmatprep.subr.mxu0 %v4702_v6 }
 0x9aa   :  { %2639 = vrot.lane.b32.xlu0 %v2637_v46, %s3677_s20  ;;  %v1403_v23 = vsel %vm520_vm2, %v1392_v17, 0.0 }
 0x9ab   :  { %v1376_v21 = vpop.permute.xlu1 %1375  ;;  %v1404_v34 = vadd.f32 %v1403_v23, %v1402_v53  ;;  %v1643_v23 = vld [vmem:[%s4685_s7 + $0x250] sm:$0xff]  ;;  %v1642_v53 = vld [vmem:[%s4685_s7 + $0x248] sm:$0xff] }
 0x9ac   :  { %v1393_v49 = vmul.f32 %v1376_v21, %v3886_v15  ;;  %3580 = vmatpush3.msra.mxu0 %v1643_v23  ;;  %v3101_v23 = vld [vmem:[%s4684_s6] sm:$0xff] }
 0x9ad   :  { %3581 = vmatprep.subr.mxu0 %v4702_v6 }
 0x9ae   :  { %v1405_v16 = vsel %vm520_vm2, %v1393_v49, 0.0  ;;  %3582 = vmatpush3.msra.mxu0 %v1642_v53 }
 0x9af   :  { %v1406_v30 = vadd.f32 %v1405_v16, %v1404_v34  ;;  %v2580_v60 = vpop.permute.xlu1 %2579  ;;  %3583 = vmatprep.subr.mxu0 %v4702_v6  ;;  %v2636_v16 = vmul.f32 0.25, %v4518_v43 }
 0x9b0   :  { %v2613_v13 = vmul.f32 %v2580_v60, %v4176_v62 }
 0x9b2   :  { %v2621_v55 = vsel %vm520_vm2, %v2613_v13, 0.0 }
 0x9b6   :  { %v1381_v0 = vpop.permute.xlu0 %1380 }
 0x9b7   :  { %v1394_v59 = vmul.f32 %v1381_v0, %v3893_v22  ;;  %v1641_v0 = vld [vmem:[%s4685_s7 + $0x240] sm:$0xff] }
 0x9b8   :  { %3584 = vmatpush3.msra.mxu0 %v1641_v0 }
 0x9b9   :  { %v1407_v32 = vsel %vm520_vm2, %v1394_v59, 0.0 }
 0x9ba   :  { %v1386_v28 = vpop.permute.xlu0 %1385  ;;  %v1408_v35 = vadd.f32 %v1407_v32, %v1406_v30 }
 0x9bb   :  { %v1395_v7 = vmul.f32 %v1386_v28, %v3900_v29 }
 0x9bd   :  { %v1409_v3 = vsel %vm520_vm2, %v1395_v7, 0.0 }
 0x9be   :  { %v1410_v15 = vadd.f32 %v1409_v3, %v1408_v35  ;;  %v2575_v12 = vpop.permute.xlu1 %2574  ;;  %v3224_v35 = vld [vmem:[%s4685_s7 + $0x238] ss:$0 sm:$0xff] }
 0x9bf   :  { %v2612_v22 = vmul.f32 %v2575_v12, %v4136_v54 }
 0x9c0   :  { %v1411_v56 = vmul.f32 0.125, %v1410_v15 }
 0x9c1   :  { %v2620_v29 = vsel %vm520_vm2, %v2612_v22, 0.0 }
 0x9c2   :  { %1420 = vrot.lane.b32.xlu1 %v1411_v56, %s3677_s20  ;;  %v2590_v27 = vpop.permute.xlu1 %2589  ;;  %v2622_v37 = vadd.f32 %v2621_v55, %v2620_v29 }
 0x9c3   :  { %v2615_v45 = vmul.f32 %v2590_v27, %v4143_v51 }
 0x9c5   :  { %v2625_v54 = vsel %vm520_vm2, %v2615_v45, 0.0  ;;  %v1600_v45 = vmul.f32 0.5, %v4551_v52 }
 0x9c6   :  { %v2585_v5 = vpop.permute.xlu1 %2584 }
 0x9c7   :  { %v2614_v33 = vmul.f32 %v2585_v5, %v4184_v40 }
 0x9c9   :  { %v2623_v36 = vsel %vm520_vm2, %v2614_v33, 0.0 }
 0x9ca   :  { %v2595_v31 = vpop.permute.xlu1 %2594  ;;  %v2624_v47 = vadd.f32 %v2623_v36, %v2622_v37 }
 0x9cb   :  { %v2616_v48 = vmul.f32 %v2595_v31, %v4703_v39 }
 0x9cc   :  { %v2626_v20 = vadd.f32 %v2625_v54, %v2624_v47 }
 0x9cd   :  { %v2627_v40 = vsel %vm520_vm2, %v2616_v48, 0.0 }
 0x9ce   :  { %v2600_v38 = vpop.permute.xlu1 %2599  ;;  %v2628_v42 = vadd.f32 %v2627_v40, %v2626_v20 }
 0x9cf   :  { %v2617_v62 = vmul.f32 %v2600_v38, %v4704_v44 }
 0x9d1   :  { %v2629_v58 = vsel %vm520_vm2, %v2617_v62, 0.0 }
 0x9d2   :  { %v2610_v18 = vpop.permute.xlu1 %2609  ;;  %v2630_v4 = vadd.f32 %v2629_v58, %v2628_v42 }
 0x9d3   :  { %v2619_v2 = vmul.f32 %v2610_v18, %v4705_v24  ;;  %v3100_v18 = vld [vmem:[%s4683_s5] sm:$0xff] }
 0x9d4   :  { %v3102_v24 = vmul.f32 %v3100_v18, %v3100_v18 }
 0x9d5   :  { %v2633_v57 = vsel %vm520_vm2, %v2619_v2, 0.0 }
 0x9d6   :  { %v2654_v8 = vpop.permute.xlu1 %2653 }
 0xa19   :  { %v2605_v14 = vpop.permute.xlu0 %2604 }
 0xa1a   :  { %v2618_v51 = vmul.f32 %v2605_v14, %v4706_v11 }
 0xa1c   :  { %v2631_v46 = vsel %vm520_vm2, %v2618_v51, 0.0 }
 0xa1d   :  { %v2632_v10 = vadd.f32 %v2631_v46, %v2630_v4  ;;  %v2651_v25 = vpop.permute.xlu0 %2650  ;;  %v3191_v46 = vld [vmem:[%s4685_s7 + $0x160] ss:$0 sm:$0xff] }
 0xa1e   :  { %v2656_v1 = vsel %vm48_vm1, %v4707_v26, %v2651_v25 }
 0xa1f   :  { %v2657_v61 = vsel %vm1437_vm3, %v2656_v1, %v2654_v8  ;;  %v2634_v21 = vadd.f32 %v2633_v57, %v2632_v10  ;;  %v4708_v8 = vld [vmem:[#allocation10_spill] sm:$0xff] }
 0xa20   :  { %3575 = vmatmul.mubr.msk.f32.vlgmr.msra.gmra.mxu1 %vm2662_vm10, %v2657_v61  ;;  %v1596_v10 = vadd.f32 %v3191_v46, %v4708_v8 }
 0xa21   :  { %v2635_v19 = vmul.f32 0.125, %v2634_v21  ;;  %3590 = vmatprep.mubr.msk.f32.mxu1 %vm3669_vm0, %v4702_v6  ;;  %v1416_v17 = vpop.permute.xlu0 %1415 }
 0xa22   :  { %v1418_v63 = vadd.f32 %v1416_v17, %v1412_v50  ;;  %v1599_v57 = vmul.f32 0.5, %v1596_v10 }
 0xa23   :  { %2644 = vrot.lane.b32.xlu1 %v2635_v19, %s3677_s20 }
 0xa25   :  { %v2640_v59 = vpop.permute.xlu0 %2639 }
 0xa26   :  { %v2642_v34 = vadd.f32 %v2640_v59, %v2636_v16 }
 0xa34   :  { %v1421_v41 = vpop.permute.xlu1 %1420 }
 0xa35   :  { %v1423_v49 = vadd.f32 %v1421_v41, %v1418_v63 }
 0xa37   :  { %2824 = vrot.lane.b32.xlu0 %v1423_v49, %s3678_s0  ;;  %v2952_v7 = vmul.f32 %v1423_v49, %v1423_v49 }
 0xa95   :  { %v2645_v32 = vpop.permute.xlu1 %2644 }
 0xa96   :  { %v2647_v30 = vadd.f32 %v2645_v32, %v2642_v34  ;;  %v3115_v34 = vmul.f32 %v3101_v23, %v3101_v23 }
 0xa98   :  { %2835 = vrot.lane.b32.xlu1 %v2647_v30, %s3678_s0  ;;  %v3080_v22 = vmul.f32 %v2647_v30, %v2647_v30 }
 0xaa9   :  { %v4616_v28 = vpop.permute.xlu0 %2824 }
 0xaaa   :  { %2844 = vxpose.xlu0.b32.start.end [1/1] (short) (narrow) %v4616_v28, 8 }
 0xad3   :  { %2954 = vrot.lane.b32.xlu0 %v2952_v7, %s3678_s0 }
 0xae0   :  { %v2732_v3 = vpop.f32.mrf.mxu1 }
 0xae1   :  { %v2733_v15 = vadd.f32 %v3224_v35, %v2732_v3  ;;  %v2817_v3 = vmul.f32 0.5, %v4518_v43  ;;  %v3226_v43 = vld [vmem:[%s4685_s7 + $0x260] ss:$0 sm:$0xff]  ;;  %s3679_s7 = smov [#allocation2]  }
 0xae2   :  { %v3576_v56 = vpop.f32.mrf.mxu1 }
 0xae3   :  { %vm2736_vm3 = vcmp.ge.f32.partialorder %v2733_v15, 0.0  ;;  %v2737_v60 = vmul.f32 0.01, %v2733_v15 }
 0xae5   :  { %v2738_v12 = vsel %vm2736_vm3, %v2733_v15, %v2737_v60 }
 0xae6   :  { %3586 = vmatmul.mubr.msk.f32.vlgmr.msra.gmra.mxu0 %vm48_vm1, %v2738_v12  ;;  %vm2832_vm1 = vcmask 285696  }
 0xb0a   :  { %v4624_v27 = vpop.permute.xlu1 %2835 }
 0xb0b   :  { %2973 = vxpose.xlu1.b32.start.end [1/1] (short) (narrow) %v4624_v27, 8 }
 0xb26   :  { %v2860_v5 = vpop.trf.xlu0 }
 0xb27   :  { %3589 = vmatpush3.msk.msra.mxu1 %vm2878_vm11, %v2860_v5 }
 0xb28   :  { %3591 = vmatmul.mubr.msk.f32.vlgmr.msra.gmra.mxu1 %vm520_vm2, %v4616_v28  ;;  %3593 = vmatprep.subr.mxu1 %v4702_v6 }
 0xb29   :  { %3082 = vrot.lane.b32.xlu1 %v3080_v22, %s3678_s0  ;;  %3595 = vmatprep.mubr.msk.f32.mxu1 %vm3669_vm0, %v4702_v6  ;;  %v2960_v6 = vmul.f32 %v2860_v5, %v2860_v5  ;;  %vm2961_vm0 = vcmask 59392  }
 0xb2b   :  { %v2962_v47 = vsel %vm2961_vm0, %v2960_v6, 0.0 }
 0xb2c   :  { %v2963_v38 = vrot.slane %v2962_v47, 4 }
 0xb2e   :  { %v2964_v39 = vadd.f32 %v2963_v38, %v2962_v47 }
 0xb30   :  { %v2965_v48 = vrot.slane %v2964_v39, 2 }
 0xb32   :  { %v2966_v54 = vadd.f32 %v2965_v48, %v2964_v39 }
 0xb34   :  { %v2967_v44 = vrot.slane %v2966_v54, 1 }
 0xb36   :  { %v2968_v20 = vadd.f32 %v2967_v44, %v2966_v54 }
 0xb45   :  { %v2955_v13 = vpop.permute.xlu0 %2954 }
 0xb46   :  { %v2957_v33 = vsel %vm520_vm2, %v2955_v13, 0.0 }
 0xb47   :  { %2958 = vadd.xlane.f32.xlu0 %v2957_v33 }
 0xb87   :  { %v2989_v31 = vpop.trf.xlu1 }
 0xb88   :  { %3594 = vmatpush3.msk.msra.mxu1 %vm2878_vm11, %v2989_v31  ;;  %v3088_v61 = vmul.f32 %v2989_v31, %v2989_v31 }
 0xb89   :  { %3596 = vmatmul.mubr.msk.f32.vlgmr.msra.gmra.mxu1 %vm520_vm2, %v4624_v27 }
 0xb8a   :  { %v3089_v21 = vsel %vm2961_vm0, %v3088_v61, 0.0 }
 0xb8b   :  { %v3090_v19 = vrot.slane %v3089_v21, 4 }
 0xb8d   :  { %v3091_v50 = vadd.f32 %v3090_v19, %v3089_v21 }
 0xb8f   :  { %v3092_v17 = vrot.slane %v3091_v50, 2 }
 0xb91   :  { %v3093_v63 = vadd.f32 %v3092_v17, %v3091_v50 }
 0xb93   :  { %v3094_v41 = vrot.slane %v3093_v63, 1 }
 0xb95   :  { %v3095_v49 = vadd.f32 %v3094_v41, %v3093_v63 }
 0xb9b   :  { %v3083_v29 = vpop.permute.xlu1 %3082 }
 0xb9c   :  { %v3085_v55 = vsel %vm520_vm2, %v3083_v29, 0.0 }
 0xb9d   :  { %3086 = vadd.xlane.f32.xlu1 %v3085_v55 }
 0xba6   :  { %v4637_v36 = vpop.f32.mrf.mxu0 }
 0xba7   :  { %v2813_v29 = vadd.f32 %v3226_v43, %v4637_v36 }
 0xba8   :  { %v3587_v37 = vpop.f32.mrf.mxu0 }
 0xbae   :  { %1602 = vrot.lane.b32.xlu1 %v1600_v45, %s3667_s17  ;;  %v2816_v45 = vmul.f32 0.5, %v2813_v29 }
 0xbd0   :  { %v2959_v62 = vpop.xlane.xlu0 %2958 }
 0xbd1   :  { %v2969_v58 = vadd.f32 %v2968_v20, %v2959_v62 }
 0xbe8   :  { %v2948_v40 = vpop.f32.mrf.mxu1 }
 0xbe9   :  { %v2970_v52 = vmul.f32 2.0, %v2948_v40 }
 0xbea   :  { %v3592_v42 = vpop.f32.mrf.mxu1 }
 0xbeb   :  { %v2971_v14 = vsub.f32 %v2969_v58, %v2970_v52 }
 0xbed   :  { %v2972_v2 = vmax.f32 %v2971_v14, 0.0 }
 0xbef   :  { %v3103_v11 = vsub.f32 %v2972_v2, %v3102_v24 }
 0xbf1   :  { %v3104_v51 = vmul.f32 %v3103_v11, %v3103_v11 }
 0xbf3   :  { %v3105_v4 = vsel %vm282_vm5, %v3104_v51, 0.0 }
 0xbf4   :  { %3106 = vadd.xlane.f32.xlu0 %v3105_v4 }
 0xc26   :  { %v3087_v25 = vpop.xlane.xlu1 %3086 }
 0xc27   :  { %v3096_v53 = vadd.f32 %v3095_v49, %v3087_v25 }
 0xc2a   :  { %v1603_v26 = vpop.permute.xlu1 %1602 }
 0xc2b   :  { %v1605_v1 = vadd.f32 %v1603_v26, %v1599_v57 }
 0xc2d   :  { %2828 = vrot.lane.b32.xlu1 %v1605_v1, %s3677_s20 }
 0xc49   :  { %v3076_v9 = vpop.f32.mrf.mxu1 }
 0xc4a   :  { %v3097_v0 = vmul.f32 2.0, %v3076_v9 }
 0xc4b   :  { %v3597_v16 = vpop.f32.mrf.mxu1 }
 0xc4c   :  { %v3098_v59 = vsub.f32 %v3096_v53, %v3097_v0 }
 0xc4e   :  { %v3099_v32 = vmax.f32 %v3098_v59, 0.0 }
 0xc50   :  { %v3116_v30 = vsub.f32 %v3099_v32, %v3115_v34 }
 0xc52   :  { %v3117_v7 = vmul.f32 %v3116_v30, %v3116_v30 }
 0xc54   :  { %v3118_v35 = vsel %vm282_vm5, %v3117_v7, 0.0 }
 0xc55   :  { %3119 = vadd.xlane.f32.xlu0 %v3118_v35 }
 0xc6b   :  { %2819 = vrot.lane.b32.xlu0 %v2817_v3, %s3667_s17 }
 0xc7d   :  { %v3107_v15 = vpop.xlane.xlu0 %3106 }
 0xc7e   :  { %v3108_v56 = vrot.slane %v3107_v15, 4 }
 0xc80   :  { %v3109_v60 = vadd.f32 %v3108_v56, %v3107_v15 }
 0xc82   :  { %v3110_v12 = vrot.slane %v3109_v60, 2 }
 0xc84   :  { %v3111_v5 = vadd.f32 %v3110_v12, %v3109_v60 }
 0xc86   :  { %v3112_v22 = vrot.slane %v3111_v5, 1 }
 0xc88   :  { %v3113_v13 = vadd.f32 %v3112_v22, %v3111_v5 }
 0xc8a   :  { %3598 = vpush %v3113_v13 }
 0xc9f   :  { %v2829_v33 = vpop.permute.xlu1 %2828 }
 0xca0   :  { %v2831_v31 = vsel %vm520_vm2, %v4616_v28, %v2829_v33 }
 0xca1   :  { %2833 = vst.msk [vmem:[%s4686_s8] sm:$0xff] %vm2832_vm1, %v2831_v31 }
 0xcbb   :  { %s3599_s8 = spop %3598 }
 0xcde   :  { %v3120_v55 = vpop.xlane.xlu0 %3119 }
 0xcdf   :  { %v3121_v37 = vrot.slane %v3120_v55, 4 }
 0xce1   :  { %v3122_v6 = vadd.f32 %v3121_v37, %v3120_v55 }
 0xce2   :  { %v2820_v47 = vpop.permute.xlu0 %2819 }
 0xce3   :  { %v3123_v38 = vrot.slane %v3122_v6, 2  ;;  %v2822_v39 = vadd.f32 %v2820_v47, %v2816_v45 }
 0xce5   :  { %2839 = vrot.lane.b32.xlu1 %v2822_v39, %s3677_s20  ;;  %v3124_v28 = vadd.f32 %v3123_v38, %v3122_v6 }
 0xce7   :  { %v3125_v48 = vrot.slane %v3124_v28, 1 }
 0xce9   :  { %v3126_v54 = vadd.f32 %v3125_v48, %v3124_v28 }
 0xceb   :  { %3600 = vpush %v3126_v54 }
 0xd1c   :  { %s3601_s15 = spop %3600 }
 0xd1d   :  { %s3128_s2 = sadd.f32 %s3601_s15, %s3599_s8 }
 0xd1f   :  { %3130 = sst [smem:[#allocation2]] %s3128_s2 }
 0xd20   :  { %3142 = dma.smem_to_hbm %s3679_s7, 16, %s4688_s10, [#allocation3]  }
 0xd57   :  { %v2840_v36 = vpop.permute.xlu1 %2839 }
 0xd58   :  { %v2842_v44 = vsel %vm520_vm2, %v4624_v27, %v2840_v36 }
 0xd59   :  { %2843 = vst.msk [vmem:[%s4687_s9] sm:$0xff] %vm2832_vm1, %v2842_v44 }
 0xd5a   :  { %3665 = dma.done.wait [#allocation3], 16  }
 0xd5b   :  { %3666 = vsyncadd [#allocation3], 4294967280 }
 0xd5c   :  { %3150 = sfence }
 0xd5d   :  { %3151 = vsyncpa [#allocation3], 1 }

</bundles_post_ra>
